<compile_context>
chip_gen: v7x
topology: tpu7x:2x2x1
jax: 0.10.0
libtpu: 0.0.40
codegen_flags: <defaults>
</compile_context>

<pallas_src>
import math
import functools

import jax
import jax.numpy as jnp
from jax.experimental import pallas as pl
from jax.experimental.pallas import tpu as pltpu


# ----------------------------------------------------------------------------
# Pallas kernel: full encoder layer for one batch tile (block_b, S, E)
# ----------------------------------------------------------------------------
def encoder_layer_kernel(x_ref, pe_ref,
                         wqkv_ref, bqkv_ref, wo_ref, bo_ref,
                         w1_ref, b1_ref, w2_ref, b2_ref,
                         g1_ref, be1_ref, g2_ref, be2_ref,
                         out_ref, ctx_ref, *, num_heads):
    Bt, S, E = x_ref.shape
    H = num_heads
    D = E // H

    # positional encoding (src = src + pe[:S]), broadcast over the batch tile,
    # then flatten rows -> (Bt*S, E) slab for all full-width matmuls.  f32.
    src = (x_ref[...] + pe_ref[...][None, :, :]).reshape(Bt * S, E)

    # ---- multi-head self attention -------------------------------------
    # packed QKV in-projection (bf16 operands, f32 accumulation).
    # NOTE: 1/sqrt(D) is pre-folded into the Q columns of wqkv / bqkv.
    qkv = jnp.dot(src.astype(jnp.bfloat16), wqkv_ref[...],
                  preferred_element_type=jnp.float32) + bqkv_ref[...]
    q = qkv[:, :E].reshape(Bt, S, E).astype(jnp.bfloat16)
    k = qkv[:, E:2 * E].reshape(Bt, S, E).astype(jnp.bfloat16)
    v = qkv[:, 2 * E:].reshape(Bt, S, E).astype(jnp.bfloat16)

    # Gather heads onto a leading batch axis -> (H*Bt, S, D) so scores,
    # softmax and PV each run as ONE batched op instead of a per-head loop.
    def split_heads(t):
        return jnp.concatenate(
            [t[:, :, h * D:(h + 1) * D] for h in range(H)], axis=0)

    qh, kh, vh = split_heads(q), split_heads(k), split_heads(v)

    s = jnp.einsum('bqd,bkd->bqk', qh, kh,
                   preferred_element_type=jnp.float32)        # (H*Bt, S, S)
    s = s - jnp.max(s, axis=-1, keepdims=True)
    p = jnp.exp(s)
    p = p * pl.reciprocal(jnp.sum(p, axis=-1, keepdims=True), approx=True)
    ctx = jnp.einsum('bqk,bkd->bqd', p.astype(jnp.bfloat16), vh,
                     preferred_element_type=jnp.float32)      # (H*Bt, S, D)

    # Scatter head contexts into the preallocated (Bt*S, E) VMEM slab at
    # static lane offsets (no lane-axis concatenate, no H live ctx tensors).
    # TODO(synk): for D < 128 these are masked lane stores; pad D to 128 for
    #             a fully lane-dense ctx if it ever shows up as the bottleneck.
    for h in range(H):
        ctx_ref[:, h * D:(h + 1) * D] = ctx[h * Bt:(h + 1) * Bt].reshape(Bt * S, D)

    # ONE full-width out-projection matmul on the concatenated heads.
    attn = jnp.dot(ctx_ref[...].astype(jnp.bfloat16), wo_ref[...],
                   preferred_element_type=jnp.float32) + bo_ref[...]

    # residual + LayerNorm1 (dropout1 identity in eval mode), f32 math
    y = src + attn
    mu = jnp.mean(y, axis=-1, keepdims=True)
    var = jnp.mean((y - mu) ** 2, axis=-1, keepdims=True)
    y = (y - mu) * jax.lax.rsqrt(var + 1e-5) * g1_ref[...] + be1_ref[...]

    # ---- feed-forward block (dropout identity) --------------------------
    h1 = jnp.dot(y.astype(jnp.bfloat16), w1_ref[...],
                 preferred_element_type=jnp.float32) + b1_ref[...]
    h1 = jnp.maximum(h1, 0.0)                                  # ReLU
    ffn = jnp.dot(h1.astype(jnp.bfloat16), w2_ref[...],
                  preferred_element_type=jnp.float32) + b2_ref[...]

    # residual + LayerNorm2 (dropout2 identity in eval mode)
    y = y + ffn
    mu = jnp.mean(y, axis=-1, keepdims=True)
    var = jnp.mean((y - mu) ** 2, axis=-1, keepdims=True)
    y = (y - mu) * jax.lax.rsqrt(var + 1e-5) * g2_ref[...] + be2_ref[...]

    out_ref[...] = y.reshape(Bt, S, E).astype(out_ref.dtype)


# ----------------------------------------------------------------------------
# Wrapper: parameter plumbing, VMEM budgeting, BlockSpecs, pallas_call
# ----------------------------------------------------------------------------
def self_attention_forward(src_sbe, params, num_heads, block_b=None):
    """src_sbe: (S, B, E) -- PyTorch seq-first convention."""
    S, B, E = src_sbe.shape
    DF = params["w1"].shape[0]
    H = num_heads
    D = E // H
    scale = 1.0 / math.sqrt(D)

    x = jnp.transpose(src_sbe, (1, 0, 2)).astype(jnp.float32)   # (B, S, E)
    pe = params["pe"][:S].astype(jnp.float32)                   # (S, E)

    # fold 1/sqrt(D) into the Q columns of the packed in-projection
    qscale = jnp.concatenate([jnp.full((E,), scale, jnp.float32),
                              jnp.ones((2 * E,), jnp.float32)])
    wqkv_t = (params["in_proj_w"].T * qscale[None, :]).astype(jnp.bfloat16)  # (E, 3E)
    bqkv = (params["in_proj_b"] * qscale)[None, :].astype(jnp.float32)       # (1, 3E)
    wo_t = params["out_proj_w"].T.astype(jnp.bfloat16)                       # (E, E)
    bo = params["out_proj_b"][None, :].astype(jnp.float32)                   # (1, E)
    w1_t = params["w1"].T.astype(jnp.bfloat16)                               # (E, DF)
    b1 = params["b1"][None, :].astype(jnp.float32)                           # (1, DF)
    w2_t = params["w2"].T.astype(jnp.bfloat16)                               # (DF, E)
    b2 = params["b2"][None, :].astype(jnp.float32)                           # (1, E)
    g1 = params["ln1_g"][None, :].astype(jnp.float32)
    be1 = params["ln1_b"][None, :].astype(jnp.float32)
    g2 = params["ln2_g"][None, :].astype(jnp.float32)
    be2 = params["ln2_b"][None, :].astype(jnp.float32)

    consts = (pe, wqkv_t, bqkv, wo_t, bo, w1_t, b1, w2_t, b2, g1, be1, g2, be2)
    const_bytes = sum(int(a.size) * a.dtype.itemsize for a in consts)

    # --- chip-aware VMEM budget (leave headroom for Mosaic internal scratch) -
    try:
        vmem_cap = int(pltpu.get_tpu_info().vmem_capacity_bytes)
    except Exception:
        vmem_cap = 64 << 20          # conservative (v7x-sized) if unavailable
    budget = (vmem_cap * 3) // 4     # ~48 MiB of 64 on v7x, ~96 MiB of 128 on v5e/v6e

    # per-batch-element in-kernel intermediates (f32 unless noted):
    #   src/ctx/attn/ffn slabs + qkv, bf16 q/k/v, batched scores+probs(+bf16),
    #   FFN hidden h1 (f32 + bf16 copy).
    per_elem = (4 * S * (4 * E + 3 * E)            # src, ctx, attn, ffn, qkv
                + 2 * S * 3 * E                    # bf16 q/k/v
                + 2 * 4 * H * S * S + 2 * H * S * S  # scores, exp, bf16 probs
                + 4 * S * DF + 2 * S * DF)         # h1 f32 + bf16 copy

    def fits(bb):
        io = 2 * 2 * bb * S * E * 4                # in+out blocks, double-buffered
        return const_bytes + io + int(1.25 * per_elem * bb) <= budget

    if block_b is None:
        divisors = [d for d in range(1, B + 1) if B % d == 0]
        fitting = [d for d in divisors if fits(d)] or [1]
        # prefer an even number of grid steps (>= 2) so both v7x TensorCores
        # get balanced work; among those take the largest batch tile.
        even = [d for d in fitting if (B // d) >= 2 and (B // d) % 2 == 0]
        block_b = max(even) if even else max(fitting)
    n_blocks = B // block_b

    kernel = functools.partial(encoder_layer_kernel, num_heads=num_heads)
    const_shapes = [(S, E),
                    (E, 3 * E), (1, 3 * E), (E, E), (1, E),
                    (E, DF), (1, DF), (DF, E), (1, E),
                    (1, E), (1, E), (1, E), (1, E)]

    def call(single_buffer_consts):
        # constant-index weight specs: single-buffer them (resident across the
        # whole grid) when supported; fall back to default pipelining otherwise.
        mode = pl.Buffered(1) if single_buffer_consts else None

        def const_spec(shape):
            return pl.BlockSpec(shape, lambda b: (0, 0), pipeline_mode=mode)

        in_specs = ([pl.BlockSpec((block_b, S, E), lambda b: (b, 0, 0))]
                    + [const_spec(s) for s in const_shapes])

        return pl.pallas_call(
            kernel,
            out_shape=jax.ShapeDtypeStruct((B, S, E), jnp.float32),
            grid=(n_blocks,),
            in_specs=in_specs,
            out_specs=pl.BlockSpec((block_b, S, E), lambda b: (b, 0, 0)),
            scratch_shapes=[pltpu.VMEM((block_b * S, E), jnp.float32)],
            compiler_params=pltpu.CompilerParams(
                dimension_semantics=("parallel",),
                vmem_limit_bytes=int(budget)),
        )(x, pe, wqkv_t, bqkv, wo_t, bo, w1_t, b1, w2_t, b2, g1, be1, g2, be2)

    try:
        out = call(True)
    except Exception:
        out = call(False)   # only differs in pipeline_mode of constant specs

    return jnp.transpose(out, (1, 0, 2))                        # back to (S, B, E)


# ----------------------------------------------------------------------------
# Pure-JAX (f32) reference of the PyTorch forward, for a sanity check
# ----------------------------------------------------------------------------
def reference_forward(src_sbe, params, num_heads):
    S, B, E = src_sbe.shape
    H, D = num_heads, E // num_heads
    src = src_sbe + params["pe"][:S][:, None, :]
    qkv = src @ params["in_proj_w"].T + params["in_proj_b"]       # (S, B, 3E)
    q, k, v = qkv[..., :E], qkv[..., E:2 * E], qkv[..., 2 * E:]

    def heads(t):                                                 # -> (B, H, S, D)
        return t.reshape(S, B, H, D).transpose(1, 2, 0, 3)

    qh, kh, vh = heads(q), heads(k), heads(v)
    s = jnp.einsum('bhqd,bhkd->bhqk', qh, kh) / math.sqrt(D)
    p = jax.nn.softmax(s, axis=-1)
    ctx = jnp.einsum('bhqk,bhkd->bhqd', p, vh)
    ctx = ctx.transpose(2, 0, 1, 3).reshape(S, B, E)
    attn = ctx @ params["out_proj_w"].T + params["out_proj_b"]

    def ln(x, g, b):
        mu = x.mean(-1, keepdims=True)
        var = ((x - mu) ** 2).mean(-1, keepdims=True)
        return (x - mu) / jnp.sqrt(var + 1e-5) * g + b

    h = ln(src + attn, params["ln1_g"], params["ln1_b"])
    ffn = jax.nn.relu(h @ params["w1"].T + params["b1"]) @ params["w2"].T + params["b2"]
    return ln(h + ffn, params["ln2_g"], params["ln2_b"])


# ----------------------------------------------------------------------------
# Deterministic parameter construction (synthetic, no checkpoint)
# ----------------------------------------------------------------------------
def make_positional_encoding(embed_dim, max_len):
    position = jnp.arange(max_len, dtype=jnp.float32)[:, None]
    div_term = jnp.exp(jnp.arange(0, embed_dim, 2, dtype=jnp.float32) *
                       (-math.log(10000.0) / embed_dim))
    pe = jnp.zeros((max_len, embed_dim), jnp.float32)
    pe = pe.at[:, 0::2].set(jnp.sin(position * div_term))
    pe = pe.at[:, 1::2].set(jnp.cos(position * div_term))
    return pe                                # (max_len, E); broadcast over batch


def make_params(key, embed_dim, dim_feedforward, max_len=5000):
    ks = jax.random.split(key, 8)
    s = 0.02
    return {
        "in_proj_w": s * jax.random.normal(ks[0], (3 * embed_dim, embed_dim), jnp.float32),
        "in_proj_b": s * jax.random.normal(ks[1], (3 * embed_dim,), jnp.float32),
        "out_proj_w": s * jax.random.normal(ks[2], (embed_dim, embed_dim), jnp.float32),
        "out_proj_b": s * jax.random.normal(ks[3], (embed_dim,), jnp.float32),
        "w1": s * jax.random.normal(ks[4], (dim_feedforward, embed_dim), jnp.float32),
        "b1": s * jax.random.normal(ks[5], (dim_feedforward,), jnp.float32),
        "w2": s * jax.random.normal(ks[6], (embed_dim, dim_feedforward), jnp.float32),
        "b2": s * jax.random.normal(ks[7], (embed_dim,), jnp.float32),
        "ln1_g": jnp.ones((embed_dim,), jnp.float32),
        "ln1_b": jnp.zeros((embed_dim,), jnp.float32),
        "ln2_g": jnp.ones((embed_dim,), jnp.float32),
        "ln2_b": jnp.zeros((embed_dim,), jnp.float32),
        "pe": make_positional_encoding(embed_dim, max_len),
    }


if __name__ == "__main__":
    # small shapes consistent with the module's forward: src is (S, B, E).
    # NOTE: correctness-only shapes; tune/benchmark at E >= 256, S >= 128.
    S, B, E = 8, 2, 32
    num_heads = 4
    dim_feedforward = 64

    key = jax.random.PRNGKey(0)
    k_src, k_par = jax.random.split(key)
    src = jax.random.normal(k_src, (S, B, E), dtype=jnp.float32)
    params = make_params(k_par, E, dim_feedforward, max_len=5000)

    out = self_attention_forward(src, params, num_heads)
    out = jax.block_until_ready(out)
    assert out.shape == (S, B, E)
    assert bool(jnp.all(jnp.isfinite(out)))

    # loose tolerance: kernel matmuls run in bf16 with f32 accumulation,
    # 1/sqrt(D) folded into bf16 Q weights, approx softmax reciprocal.
    ref = reference_forward(src, params, num_heads)
    max_err = float(jnp.max(jnp.abs(out - ref)))
    assert max_err < 0.25, f"max abs error vs f32 reference too large: {max_err}"

    print("KERNEL_OK")
</pallas_src>

<mosaic_0001>
module attributes {stable_mosaic.version = 11 : i64} {
  func.func @encoder_layer_kernel(%arg0: i32, %arg1: memref<1x8x32xf32, #tpu.memory_space<vmem>>, %arg2: memref<8x32xf32, #tpu.memory_space<vmem>>, %arg3: memref<32x96xbf16, #tpu.memory_space<vmem>>, %arg4: memref<1x96xf32, #tpu.memory_space<vmem>>, %arg5: memref<32x32xbf16, #tpu.memory_space<vmem>>, %arg6: memref<1x32xf32, #tpu.memory_space<vmem>>, %arg7: memref<32x64xbf16, #tpu.memory_space<vmem>>, %arg8: memref<1x64xf32, #tpu.memory_space<vmem>>, %arg9: memref<64x32xbf16, #tpu.memory_space<vmem>>, %arg10: memref<1x32xf32, #tpu.memory_space<vmem>>, %arg11: memref<1x32xf32, #tpu.memory_space<vmem>>, %arg12: memref<1x32xf32, #tpu.memory_space<vmem>>, %arg13: memref<1x32xf32, #tpu.memory_space<vmem>>, %arg14: memref<1x32xf32, #tpu.memory_space<vmem>>, %arg15: memref<1x8x32xf32, #tpu.memory_space<vmem>>, %arg16: memref<8x32xf32, #tpu.memory_space<vmem>>) attributes {dimension_semantics = [#tpu.dimension_semantics<parallel>], iteration_bounds = array<i64: 2>, scalar_prefetch = 0 : i64, scratch_operands = 1 : i64, tpu.core_type = #tpu.core_type<tc>, window_params = [{transform_indices = @transform_0, window_bounds = array<i64: 1, 8, 32>}, {pipeline_mode = #tpu.pipeline_mode<synchronous>, transform_indices = @transform_1, window_bounds = array<i64: 8, 32>}, {pipeline_mode = #tpu.pipeline_mode<synchronous>, transform_indices = @transform_2, window_bounds = array<i64: 32, 96>}, {pipeline_mode = #tpu.pipeline_mode<synchronous>, transform_indices = @transform_3, window_bounds = array<i64: 1, 96>}, {pipeline_mode = #tpu.pipeline_mode<synchronous>, transform_indices = @transform_4, window_bounds = array<i64: 32, 32>}, {pipeline_mode = #tpu.pipeline_mode<synchronous>, transform_indices = @transform_5, window_bounds = array<i64: 1, 32>}, {pipeline_mode = #tpu.pipeline_mode<synchronous>, transform_indices = @transform_6, window_bounds = array<i64: 32, 64>}, {pipeline_mode = #tpu.pipeline_mode<synchronous>, transform_indices = @transform_7, window_bounds = array<i64: 1, 64>}, {pipeline_mode = #tpu.pipeline_mode<synchronous>, transform_indices = @transform_8, window_bounds = array<i64: 64, 32>}, {pipeline_mode = #tpu.pipeline_mode<synchronous>, transform_indices = @transform_9, window_bounds = array<i64: 1, 32>}, {pipeline_mode = #tpu.pipeline_mode<synchronous>, transform_indices = @transform_10, window_bounds = array<i64: 1, 32>}, {pipeline_mode = #tpu.pipeline_mode<synchronous>, transform_indices = @transform_11, window_bounds = array<i64: 1, 32>}, {pipeline_mode = #tpu.pipeline_mode<synchronous>, transform_indices = @transform_12, window_bounds = array<i64: 1, 32>}, {pipeline_mode = #tpu.pipeline_mode<synchronous>, transform_indices = @transform_13, window_bounds = array<i64: 1, 32>}, {transform_indices = @transform_14, window_bounds = array<i64: 1, 8, 32>}]} {
    %c0 = arith.constant 0 : index
    %c0_0 = arith.constant 0 : index
    %c0_1 = arith.constant 0 : index
    %0 = vector.load %arg1[%c0, %c0_0, %c0_1] : memref<1x8x32xf32, #tpu.memory_space<vmem>>, vector<1x8x32xf32>
    %c0_2 = arith.constant 0 : index
    %c0_3 = arith.constant 0 : index
    %1 = vector.load %arg2[%c0_2, %c0_3] : memref<8x32xf32, #tpu.memory_space<vmem>>, vector<8x32xf32>
    %2 = vector.shape_cast %1 : vector<8x32xf32> to vector<1x8x32xf32>
    %3 = arith.addf %0, %2 : vector<1x8x32xf32>
    %4 = vector.shape_cast %3 : vector<1x8x32xf32> to vector<8x32xf32>
    %5 = arith.truncf %4 : vector<8x32xf32> to vector<8x32xbf16>
    %c0_4 = arith.constant 0 : index
    %c0_5 = arith.constant 0 : index
    %6 = vector.load %arg3[%c0_4, %c0_5] : memref<32x96xbf16, #tpu.memory_space<vmem>>, vector<32x96xbf16>
    %cst = arith.constant dense<0.000000e+00> : vector<8x96xf32>
    %7 = tpu.matmul %5, %6, %cst {dimension_numbers = #tpu.dot_dimension_numbers<[1], [0], [0], [1], [0, 0, 1, 1], [], []>} : vector<8x32xbf16>, vector<32x96xbf16>, vector<8x96xf32> -> vector<8x96xf32>
    %c0_6 = arith.constant 0 : index
    %c0_7 = arith.constant 0 : index
    %8 = vector.load %arg4[%c0_6, %c0_7] : memref<1x96xf32, #tpu.memory_space<vmem>>, vector<1x96xf32>
    %9 = vector.broadcast %8 : vector<1x96xf32> to vector<8x96xf32>
    %10 = arith.addf %7, %9 : vector<8x96xf32>
    %11 = vector.extract_strided_slice %10 {offsets = [0, 0], sizes = [8, 32], strides = [1, 1]} : vector<8x96xf32> to vector<8x32xf32>
    %12 = vector.shape_cast %11 : vector<8x32xf32> to vector<1x8x32xf32>
    %13 = arith.truncf %12 : vector<1x8x32xf32> to vector<1x8x32xbf16>
    %14 = vector.extract_strided_slice %10 {offsets = [0, 32], sizes = [8, 32], strides = [1, 1]} : vector<8x96xf32> to vector<8x32xf32>
    %15 = vector.shape_cast %14 : vector<8x32xf32> to vector<1x8x32xf32>
    %16 = arith.truncf %15 : vector<1x8x32xf32> to vector<1x8x32xbf16>
    %17 = vector.extract_strided_slice %10 {offsets = [0, 64], sizes = [8, 32], strides = [1, 1]} : vector<8x96xf32> to vector<8x32xf32>
    %18 = vector.shape_cast %17 : vector<8x32xf32> to vector<1x8x32xf32>
    %19 = arith.truncf %18 : vector<1x8x32xf32> to vector<1x8x32xbf16>
    %20 = vector.extract_strided_slice %13 {offsets = [0, 0, 0], sizes = [1, 8, 8], strides = [1, 1, 1]} : vector<1x8x32xbf16> to vector<1x8x8xbf16>
    %21 = vector.extract_strided_slice %13 {offsets = [0, 0, 8], sizes = [1, 8, 8], strides = [1, 1, 1]} : vector<1x8x32xbf16> to vector<1x8x8xbf16>
    %22 = vector.extract_strided_slice %13 {offsets = [0, 0, 16], sizes = [1, 8, 8], strides = [1, 1, 1]} : vector<1x8x32xbf16> to vector<1x8x8xbf16>
    %23 = vector.extract_strided_slice %13 {offsets = [0, 0, 24], sizes = [1, 8, 8], strides = [1, 1, 1]} : vector<1x8x32xbf16> to vector<1x8x8xbf16>
    %24 = tpu.concatenate %20, %21, %22, %23 in 0 : vector<1x8x8xbf16>, vector<1x8x8xbf16>, vector<1x8x8xbf16>, vector<1x8x8xbf16> -> vector<4x8x8xbf16>
    %25 = vector.extract_strided_slice %16 {offsets = [0, 0, 0], sizes = [1, 8, 8], strides = [1, 1, 1]} : vector<1x8x32xbf16> to vector<1x8x8xbf16>
    %26 = vector.extract_strided_slice %16 {offsets = [0, 0, 8], sizes = [1, 8, 8], strides = [1, 1, 1]} : vector<1x8x32xbf16> to vector<1x8x8xbf16>
    %27 = vector.extract_strided_slice %16 {offsets = [0, 0, 16], sizes = [1, 8, 8], strides = [1, 1, 1]} : vector<1x8x32xbf16> to vector<1x8x8xbf16>
    %28 = vector.extract_strided_slice %16 {offsets = [0, 0, 24], sizes = [1, 8, 8], strides = [1, 1, 1]} : vector<1x8x32xbf16> to vector<1x8x8xbf16>
    %29 = tpu.concatenate %25, %26, %27, %28 in 0 : vector<1x8x8xbf16>, vector<1x8x8xbf16>, vector<1x8x8xbf16>, vector<1x8x8xbf16> -> vector<4x8x8xbf16>
    %30 = vector.extract_strided_slice %19 {offsets = [0, 0, 0], sizes = [1, 8, 8], strides = [1, 1, 1]} : vector<1x8x32xbf16> to vector<1x8x8xbf16>
    %31 = vector.extract_strided_slice %19 {offsets = [0, 0, 8], sizes = [1, 8, 8], strides = [1, 1, 1]} : vector<1x8x32xbf16> to vector<1x8x8xbf16>
    %32 = vector.extract_strided_slice %19 {offsets = [0, 0, 16], sizes = [1, 8, 8], strides = [1, 1, 1]} : vector<1x8x32xbf16> to vector<1x8x8xbf16>
    %33 = vector.extract_strided_slice %19 {offsets = [0, 0, 24], sizes = [1, 8, 8], strides = [1, 1, 1]} : vector<1x8x32xbf16> to vector<1x8x8xbf16>
    %34 = tpu.concatenate %30, %31, %32, %33 in 0 : vector<1x8x8xbf16>, vector<1x8x8xbf16>, vector<1x8x8xbf16>, vector<1x8x8xbf16> -> vector<4x8x8xbf16>
    "tpu.trace_start"() <{level = 10 : i32, message = "bqd,bkd->bqk"}> : () -> ()
    %cst_8 = arith.constant dense<0.000000e+00> : vector<4x8x8xf32>
    %35 = tpu.matmul %24, %29, %cst_8 {dimension_numbers = #tpu.dot_dimension_numbers<[2], [2], [1], [1], [0, 0, 0, 1, 1, 1], [0], [0]>} : vector<4x8x8xbf16>, vector<4x8x8xbf16>, vector<4x8x8xf32> -> vector<4x8x8xf32>
    "tpu.trace_stop"() : () -> ()
    %cst_9 = arith.constant dense<0xFF800000> : vector<4x8xf32>
    %36 = vector.multi_reduction <maximumf>, %35, %cst_9 [2] : vector<4x8x8xf32> to vector<4x8xf32>
    %37 = vector.shape_cast %36 : vector<4x8xf32> to vector<4x8x1xf32>
    %38 = vector.broadcast %37 : vector<4x8x1xf32> to vector<4x8x8xf32>
    %39 = arith.subf %35, %38 : vector<4x8x8xf32>
    %40 = math.exp %39 : vector<4x8x8xf32>
    %cst_10 = arith.constant dense<0.000000e+00> : vector<4x8xf32>
    %41 = vector.multi_reduction <add>, %40, %cst_10 [2] : vector<4x8x8xf32> to vector<4x8xf32>
    %42 = vector.shape_cast %41 : vector<4x8xf32> to vector<4x8x1xf32>
    %43 = tpu.reciprocal %42 {approx = true} : vector<4x8x1xf32> -> vector<4x8x1xf32>
    %44 = vector.broadcast %43 : vector<4x8x1xf32> to vector<4x8x8xf32>
    %45 = arith.mulf %40, %44 : vector<4x8x8xf32>
    %46 = arith.truncf %45 : vector<4x8x8xf32> to vector<4x8x8xbf16>
    "tpu.trace_start"() <{level = 10 : i32, message = "bqk,bkd->bqd"}> : () -> ()
    %cst_11 = arith.constant dense<0.000000e+00> : vector<4x8x8xf32>
    %47 = tpu.matmul %46, %34, %cst_11 {dimension_numbers = #tpu.dot_dimension_numbers<[2], [1], [1], [2], [0, 0, 0, 1, 1, 2], [0], [0]>} : vector<4x8x8xbf16>, vector<4x8x8xbf16>, vector<4x8x8xf32> -> vector<4x8x8xf32>
    "tpu.trace_stop"() : () -> ()
    %48 = vector.extract_strided_slice %47 {offsets = [0, 0, 0], sizes = [1, 8, 8], strides = [1, 1, 1]} : vector<4x8x8xf32> to vector<1x8x8xf32>
    %49 = vector.shape_cast %48 : vector<1x8x8xf32> to vector<8x8xf32>
    %c0_12 = arith.constant 0 : index
    %c0_13 = arith.constant 0 : index
    %50 = vector.load %arg16[%c0_12, %c0_13] : memref<8x32xf32, #tpu.memory_space<vmem>>, vector<8x8xf32>
    tpu.vector_store %arg16[%c0_12, %c0_13], %49 {strides = array<i32>} : memref<8x32xf32, #tpu.memory_space<vmem>>, vector<8x8xf32>,
    %51 = vector.extract_strided_slice %47 {offsets = [1, 0, 0], sizes = [1, 8, 8], strides = [1, 1, 1]} : vector<4x8x8xf32> to vector<1x8x8xf32>
    %52 = vector.shape_cast %51 : vector<1x8x8xf32> to vector<8x8xf32>
    %c0_14 = arith.constant 0 : index
    %c8 = arith.constant 8 : index
    %53 = vector.load %arg16[%c0_14, %c8] : memref<8x32xf32, #tpu.memory_space<vmem>>, vector<8x8xf32>
    tpu.vector_store %arg16[%c0_14, %c8], %52 {strides = array<i32>} : memref<8x32xf32, #tpu.memory_space<vmem>>, vector<8x8xf32>,
    %54 = vector.extract_strided_slice %47 {offsets = [2, 0, 0], sizes = [1, 8, 8], strides = [1, 1, 1]} : vector<4x8x8xf32> to vector<1x8x8xf32>
    %55 = vector.shape_cast %54 : vector<1x8x8xf32> to vector<8x8xf32>
    %c0_15 = arith.constant 0 : index
    %c16 = arith.constant 16 : index
    %56 = vector.load %arg16[%c0_15, %c16] : memref<8x32xf32, #tpu.memory_space<vmem>>, vector<8x8xf32>
    tpu.vector_store %arg16[%c0_15, %c16], %55 {strides = array<i32>} : memref<8x32xf32, #tpu.memory_space<vmem>>, vector<8x8xf32>,
    %57 = vector.extract_strided_slice %47 {offsets = [3, 0, 0], sizes = [1, 8, 8], strides = [1, 1, 1]} : vector<4x8x8xf32> to vector<1x8x8xf32>
    %58 = vector.shape_cast %57 : vector<1x8x8xf32> to vector<8x8xf32>
    %c0_16 = arith.constant 0 : index
    %c24 = arith.constant 24 : index
    %59 = vector.load %arg16[%c0_16, %c24] : memref<8x32xf32, #tpu.memory_space<vmem>>, vector<8x8xf32>
    tpu.vector_store %arg16[%c0_16, %c24], %58 {strides = array<i32>} : memref<8x32xf32, #tpu.memory_space<vmem>>, vector<8x8xf32>,
    %c0_17 = arith.constant 0 : index
    %c0_18 = arith.constant 0 : index
    %60 = vector.load %arg16[%c0_17, %c0_18] : memref<8x32xf32, #tpu.memory_space<vmem>>, vector<8x32xf32>
    %61 = arith.truncf %60 : vector<8x32xf32> to vector<8x32xbf16>
    %c0_19 = arith.constant 0 : index
    %c0_20 = arith.constant 0 : index
    %62 = vector.load %arg5[%c0_19, %c0_20] : memref<32x32xbf16, #tpu.memory_space<vmem>>, vector<32x32xbf16>
    %cst_21 = arith.constant dense<0.000000e+00> : vector<8x32xf32>
    %63 = tpu.matmul %61, %62, %cst_21 {dimension_numbers = #tpu.dot_dimension_numbers<[1], [0], [0], [1], [0, 0, 1, 1], [], []>} : vector<8x32xbf16>, vector<32x32xbf16>, vector<8x32xf32> -> vector<8x32xf32>
    %c0_22 = arith.constant 0 : index
    %c0_23 = arith.constant 0 : index
    %64 = vector.load %arg6[%c0_22, %c0_23] : memref<1x32xf32, #tpu.memory_space<vmem>>, vector<1x32xf32>
    %65 = vector.broadcast %64 : vector<1x32xf32> to vector<8x32xf32>
    %66 = arith.addf %63, %65 : vector<8x32xf32>
    %67 = arith.addf %4, %66 : vector<8x32xf32>
    %cst_24 = arith.constant dense<0.000000e+00> : vector<8xf32>
    %68 = vector.multi_reduction <add>, %67, %cst_24 [1] : vector<8x32xf32> to vector<8xf32>
    %69 = vector.shape_cast %68 : vector<8xf32> to vector<8x1xf32>
    %cst_25 = arith.constant 3.200000e+01 : f32
    %70 = vector.broadcast %cst_25 : f32 to vector<8x1xf32>
    %71 = arith.divf %69, %70 : vector<8x1xf32>
    %72 = vector.broadcast %71 : vector<8x1xf32> to vector<8x32xf32>
    %73 = arith.subf %67, %72 : vector<8x32xf32>
    %74 = arith.mulf %73, %73 : vector<8x32xf32>
    %cst_26 = arith.constant dense<0.000000e+00> : vector<8xf32>
    %75 = vector.multi_reduction <add>, %74, %cst_26 [1] : vector<8x32xf32> to vector<8xf32>
    %76 = vector.shape_cast %75 : vector<8xf32> to vector<8x1xf32>
    %cst_27 = arith.constant 3.200000e+01 : f32
    %77 = vector.broadcast %cst_27 : f32 to vector<8x1xf32>
    %78 = arith.divf %76, %77 : vector<8x1xf32>
    %79 = vector.broadcast %71 : vector<8x1xf32> to vector<8x32xf32>
    %80 = arith.subf %67, %79 : vector<8x32xf32>
    %cst_28 = arith.constant 9.99999974E-6 : f32
    %81 = vector.broadcast %cst_28 : f32 to vector<8x1xf32>
    %82 = arith.addf %78, %81 : vector<8x1xf32>
    %83 = math.rsqrt %82 : vector<8x1xf32>
    %84 = vector.broadcast %83 : vector<8x1xf32> to vector<8x32xf32>
    %85 = arith.mulf %80, %84 : vector<8x32xf32>
    %c0_29 = arith.constant 0 : index
    %c0_30 = arith.constant 0 : index
    %86 = vector.load %arg11[%c0_29, %c0_30] : memref<1x32xf32, #tpu.memory_space<vmem>>, vector<1x32xf32>
    %87 = vector.broadcast %86 : vector<1x32xf32> to vector<8x32xf32>
    %88 = arith.mulf %85, %87 : vector<8x32xf32>
    %c0_31 = arith.constant 0 : index
    %c0_32 = arith.constant 0 : index
    %89 = vector.load %arg12[%c0_31, %c0_32] : memref<1x32xf32, #tpu.memory_space<vmem>>, vector<1x32xf32>
    %90 = vector.broadcast %89 : vector<1x32xf32> to vector<8x32xf32>
    %91 = arith.addf %88, %90 : vector<8x32xf32>
    %92 = arith.truncf %91 : vector<8x32xf32> to vector<8x32xbf16>
    %c0_33 = arith.constant 0 : index
    %c0_34 = arith.constant 0 : index
    %93 = vector.load %arg7[%c0_33, %c0_34] : memref<32x64xbf16, #tpu.memory_space<vmem>>, vector<32x64xbf16>
    %cst_35 = arith.constant dense<0.000000e+00> : vector<8x64xf32>
    %94 = tpu.matmul %92, %93, %cst_35 {dimension_numbers = #tpu.dot_dimension_numbers<[1], [0], [0], [1], [0, 0, 1, 1], [], []>} : vector<8x32xbf16>, vector<32x64xbf16>, vector<8x64xf32> -> vector<8x64xf32>
    %c0_36 = arith.constant 0 : index
    %c0_37 = arith.constant 0 : index
    %95 = vector.load %arg8[%c0_36, %c0_37] : memref<1x64xf32, #tpu.memory_space<vmem>>, vector<1x64xf32>
    %96 = vector.broadcast %95 : vector<1x64xf32> to vector<8x64xf32>
    %97 = arith.addf %94, %96 : vector<8x64xf32>
    %cst_38 = arith.constant 0.000000e+00 : f32
    %98 = vector.broadcast %cst_38 : f32 to vector<8x64xf32>
    %99 = arith.maximumf %97, %98 : vector<8x64xf32>
    %100 = arith.truncf %99 : vector<8x64xf32> to vector<8x64xbf16>
    %c0_39 = arith.constant 0 : index
    %c0_40 = arith.constant 0 : index
    %101 = vector.load %arg9[%c0_39, %c0_40] : memref<64x32xbf16, #tpu.memory_space<vmem>>, vector<64x32xbf16>
    %cst_41 = arith.constant dense<0.000000e+00> : vector<8x32xf32>
    %102 = tpu.matmul %100, %101, %cst_41 {dimension_numbers = #tpu.dot_dimension_numbers<[1], [0], [0], [1], [0, 0, 1, 1], [], []>} : vector<8x64xbf16>, vector<64x32xbf16>, vector<8x32xf32> -> vector<8x32xf32>
    %c0_42 = arith.constant 0 : index
    %c0_43 = arith.constant 0 : index
    %103 = vector.load %arg10[%c0_42, %c0_43] : memref<1x32xf32, #tpu.memory_space<vmem>>, vector<1x32xf32>
    %104 = vector.broadcast %103 : vector<1x32xf32> to vector<8x32xf32>
    %105 = arith.addf %102, %104 : vector<8x32xf32>
    %106 = arith.addf %91, %105 : vector<8x32xf32>
    %cst_44 = arith.constant dense<0.000000e+00> : vector<8xf32>
    %107 = vector.multi_reduction <add>, %106, %cst_44 [1] : vector<8x32xf32> to vector<8xf32>
    %108 = vector.shape_cast %107 : vector<8xf32> to vector<8x1xf32>
    %cst_45 = arith.constant 3.200000e+01 : f32
    %109 = vector.broadcast %cst_45 : f32 to vector<8x1xf32>
    %110 = arith.divf %108, %109 : vector<8x1xf32>
    %111 = vector.broadcast %110 : vector<8x1xf32> to vector<8x32xf32>
    %112 = arith.subf %106, %111 : vector<8x32xf32>
    %113 = arith.mulf %112, %112 : vector<8x32xf32>
    %cst_46 = arith.constant dense<0.000000e+00> : vector<8xf32>
    %114 = vector.multi_reduction <add>, %113, %cst_46 [1] : vector<8x32xf32> to vector<8xf32>
    %115 = vector.shape_cast %114 : vector<8xf32> to vector<8x1xf32>
    %cst_47 = arith.constant 3.200000e+01 : f32
    %116 = vector.broadcast %cst_47 : f32 to vector<8x1xf32>
    %117 = arith.divf %115, %116 : vector<8x1xf32>
    %118 = vector.broadcast %110 : vector<8x1xf32> to vector<8x32xf32>
    %119 = arith.subf %106, %118 : vector<8x32xf32>
    %cst_48 = arith.constant 9.99999974E-6 : f32
    %120 = vector.broadcast %cst_48 : f32 to vector<8x1xf32>
    %121 = arith.addf %117, %120 : vector<8x1xf32>
    %122 = math.rsqrt %121 : vector<8x1xf32>
    %123 = vector.broadcast %122 : vector<8x1xf32> to vector<8x32xf32>
    %124 = arith.mulf %119, %123 : vector<8x32xf32>
    %c0_49 = arith.constant 0 : index
    %c0_50 = arith.constant 0 : index
    %125 = vector.load %arg13[%c0_49, %c0_50] : memref<1x32xf32, #tpu.memory_space<vmem>>, vector<1x32xf32>
    %126 = vector.broadcast %125 : vector<1x32xf32> to vector<8x32xf32>
    %127 = arith.mulf %124, %126 : vector<8x32xf32>
    %c0_51 = arith.constant 0 : index
    %c0_52 = arith.constant 0 : index
    %128 = vector.load %arg14[%c0_51, %c0_52] : memref<1x32xf32, #tpu.memory_space<vmem>>, vector<1x32xf32>
    %129 = vector.broadcast %128 : vector<1x32xf32> to vector<8x32xf32>
    %130 = arith.addf %127, %129 : vector<8x32xf32>
    %131 = vector.shape_cast %130 : vector<8x32xf32> to vector<1x8x32xf32>
    %c0_53 = arith.constant 0 : index
    %c0_54 = arith.constant 0 : index
    %c0_55 = arith.constant 0 : index
    %132 = vector.load %arg15[%c0_53, %c0_54, %c0_55] : memref<1x8x32xf32, #tpu.memory_space<vmem>>, vector<1x8x32xf32>
    tpu.vector_store %arg15[%c0_53, %c0_54, %c0_55], %131 {strides = array<i32>} : memref<1x8x32xf32, #tpu.memory_space<vmem>>, vector<1x8x32xf32>,
    return
  }
  func.func @transform_0(%arg0: i32) -> (i32, i32, i32) {
    %c0_i32 = arith.constant 0 : i32
    %c0_i32_0 = arith.constant 0 : i32
    %c0_i32_1 = arith.constant 0 : i32
    return %arg0, %c0_i32, %c0_i32_0 : i32, i32, i32
  }
  func.func @transform_1(%arg0: i32) -> (i32, i32) {
    %c0_i32 = arith.constant 0 : i32
    %c0_i32_0 = arith.constant 0 : i32
    %c0_i32_1 = arith.constant 0 : i32
    return %c0_i32, %c0_i32_0 : i32, i32
  }
  func.func @transform_2(%arg0: i32) -> (i32, i32) {
    %c0_i32 = arith.constant 0 : i32
    %c0_i32_0 = arith.constant 0 : i32
    %c0_i32_1 = arith.constant 0 : i32
    return %c0_i32, %c0_i32_0 : i32, i32
  }
  func.func @transform_3(%arg0: i32) -> (i32, i32) {
    %c0_i32 = arith.constant 0 : i32
    %c0_i32_0 = arith.constant 0 : i32
    %c0_i32_1 = arith.constant 0 : i32
    return %c0_i32, %c0_i32_0 : i32, i32
  }
  func.func @transform_4(%arg0: i32) -> (i32, i32) {
    %c0_i32 = arith.constant 0 : i32
    %c0_i32_0 = arith.constant 0 : i32
    %c0_i32_1 = arith.constant 0 : i32
    return %c0_i32, %c0_i32_0 : i32, i32
  }
  func.func @transform_5(%arg0: i32) -> (i32, i32) {
    %c0_i32 = arith.constant 0 : i32
    %c0_i32_0 = arith.constant 0 : i32
    %c0_i32_1 = arith.constant 0 : i32
    return %c0_i32, %c0_i32_0 : i32, i32
  }
  func.func @transform_6(%arg0: i32) -> (i32, i32) {
    %c0_i32 = arith.constant 0 : i32
    %c0_i32_0 = arith.constant 0 : i32
    %c0_i32_1 = arith.constant 0 : i32
    return %c0_i32, %c0_i32_0 : i32, i32
  }
  func.func @transform_7(%arg0: i32) -> (i32, i32) {
    %c0_i32 = arith.constant 0 : i32
    %c0_i32_0 = arith.constant 0 : i32
    %c0_i32_1 = arith.constant 0 : i32
    return %c0_i32, %c0_i32_0 : i32, i32
  }
  func.func @transform_8(%arg0: i32) -> (i32, i32) {
    %c0_i32 = arith.constant 0 : i32
    %c0_i32_0 = arith.constant 0 : i32
    %c0_i32_1 = arith.constant 0 : i32
    return %c0_i32, %c0_i32_0 : i32, i32
  }
  func.func @transform_9(%arg0: i32) -> (i32, i32) {
    %c0_i32 = arith.constant 0 : i32
    %c0_i32_0 = arith.constant 0 : i32
    %c0_i32_1 = arith.constant 0 : i32
    return %c0_i32, %c0_i32_0 : i32, i32
  }
  func.func @transform_10(%arg0: i32) -> (i32, i32) {
    %c0_i32 = arith.constant 0 : i32
    %c0_i32_0 = arith.constant 0 : i32
    %c0_i32_1 = arith.constant 0 : i32
    return %c0_i32, %c0_i32_0 : i32, i32
  }
  func.func @transform_11(%arg0: i32) -> (i32, i32) {
    %c0_i32 = arith.constant 0 : i32
    %c0_i32_0 = arith.constant 0 : i32
    %c0_i32_1 = arith.constant 0 : i32
    return %c0_i32, %c0_i32_0 : i32, i32
  }
  func.func @transform_12(%arg0: i32) -> (i32, i32) {
    %c0_i32 = arith.constant 0 : i32
    %c0_i32_0 = arith.constant 0 : i32
    %c0_i32_1 = arith.constant 0 : i32
    return %c0_i32, %c0_i32_0 : i32, i32
  }
  func.func @transform_13(%arg0: i32) -> (i32, i32) {
    %c0_i32 = arith.constant 0 : i32
    %c0_i32_0 = arith.constant 0 : i32
    %c0_i32_1 = arith.constant 0 : i32
    return %c0_i32, %c0_i32_0 : i32, i32
  }
  func.func @transform_14(%arg0: i32) -> (i32, i32, i32) {
    %c0_i32 = arith.constant 0 : i32
    %c0_i32_0 = arith.constant 0 : i32
    %c0_i32_1 = arith.constant 0 : i32
    return %arg0, %c0_i32, %c0_i32_0 : i32, i32, i32
  }
}

module attributes {stable_mosaic.version = 11 : i64} {
  func.func @encoder_layer_kernel(%arg0: i32, %arg1: memref<1x8x32xf32, #tpu.memory_space<vmem>>, %arg2: memref<8x32xf32, #tpu.memory_space<vmem>>, %arg3: memref<32x96xbf16, #tpu.memory_space<vmem>>, %arg4: memref<1x96xf32, #tpu.memory_space<vmem>>, %arg5: memref<32x32xbf16, #tpu.memory_space<vmem>>, %arg6: memref<1x32xf32, #tpu.memory_space<vmem>>, %arg7: memref<32x64xbf16, #tpu.memory_space<vmem>>, %arg8: memref<1x64xf32, #tpu.memory_space<vmem>>, %arg9: memref<64x32xbf16, #tpu.memory_space<vmem>>, %arg10: memref<1x32xf32, #tpu.memory_space<vmem>>, %arg11: memref<1x32xf32, #tpu.memory_space<vmem>>, %arg12: memref<1x32xf32, #tpu.memory_space<vmem>>, %arg13: memref<1x32xf32, #tpu.memory_space<vmem>>, %arg14: memref<1x32xf32, #tpu.memory_space<vmem>>, %arg15: memref<1x8x32xf32, #tpu.memory_space<vmem>>, %arg16: memref<8x32xf32, #tpu.memory_space<vmem>>) attributes {dimension_semantics = [#tpu.dimension_semantics<parallel>], iteration_bounds = array<i64: 2>, scalar_prefetch = 0 : i64, scratch_operands = 1 : i64, tpu.core_type = #tpu.core_type<tc>, window_params = [{transform_indices = @transform_0, window_bounds = array<i64: 1, 8, 32>}, {pipeline_mode = #tpu.pipeline_mode<synchronous>, transform_indices = @transform_1, window_bounds = array<i64: 8, 32>}, {pipeline_mode = #tpu.pipeline_mode<synchronous>, transform_indices = @transform_2, window_bounds = array<i64: 32, 96>}, {pipeline_mode = #tpu.pipeline_mode<synchronous>, transform_indices = @transform_3, window_bounds = array<i64: 1, 96>}, {pipeline_mode = #tpu.pipeline_mode<synchronous>, transform_indices = @transform_4, window_bounds = array<i64: 32, 32>}, {pipeline_mode = #tpu.pipeline_mode<synchronous>, transform_indices = @transform_5, window_bounds = array<i64: 1, 32>}, {pipeline_mode = #tpu.pipeline_mode<synchronous>, transform_indices = @transform_6, window_bounds = array<i64: 32, 64>}, {pipeline_mode = #tpu.pipeline_mode<synchronous>, transform_indices = @transform_7, window_bounds = array<i64: 1, 64>}, {pipeline_mode = #tpu.pipeline_mode<synchronous>, transform_indices = @transform_8, window_bounds = array<i64: 64, 32>}, {pipeline_mode = #tpu.pipeline_mode<synchronous>, transform_indices = @transform_9, window_bounds = array<i64: 1, 32>}, {pipeline_mode = #tpu.pipeline_mode<synchronous>, transform_indices = @transform_10, window_bounds = array<i64: 1, 32>}, {pipeline_mode = #tpu.pipeline_mode<synchronous>, transform_indices = @transform_11, window_bounds = array<i64: 1, 32>}, {pipeline_mode = #tpu.pipeline_mode<synchronous>, transform_indices = @transform_12, window_bounds = array<i64: 1, 32>}, {pipeline_mode = #tpu.pipeline_mode<synchronous>, transform_indices = @transform_13, window_bounds = array<i64: 1, 32>}, {transform_indices = @transform_14, window_bounds = array<i64: 1, 8, 32>}]} {
    %c0 = arith.constant 0 : index
    %c0_0 = arith.constant 0 : index
    %c0_1 = arith.constant 0 : index
    %0 = vector.load %arg1[%c0, %c0_0, %c0_1] : memref<1x8x32xf32, #tpu.memory_space<vmem>>, vector<1x8x32xf32>
    %c0_2 = arith.constant 0 : index
    %c0_3 = arith.constant 0 : index
    %1 = vector.load %arg2[%c0_2, %c0_3] : memref<8x32xf32, #tpu.memory_space<vmem>>, vector<8x32xf32>
    %2 = vector.shape_cast %1 : vector<8x32xf32> to vector<1x8x32xf32>
    %3 = arith.addf %0, %2 : vector<1x8x32xf32>
    %4 = vector.shape_cast %3 : vector<1x8x32xf32> to vector<8x32xf32>
    %5 = arith.truncf %4 : vector<8x32xf32> to vector<8x32xbf16>
    %c0_4 = arith.constant 0 : index
    %c0_5 = arith.constant 0 : index
    %6 = vector.load %arg3[%c0_4, %c0_5] : memref<32x96xbf16, #tpu.memory_space<vmem>>, vector<32x96xbf16>
    %cst = arith.constant dense<0.000000e+00> : vector<8x96xf32>
    %7 = tpu.matmul %5, %6, %cst {dimension_numbers = #tpu.dot_dimension_numbers<[1], [0], [0], [1], [0, 0, 1, 1], [], []>} : vector<8x32xbf16>, vector<32x96xbf16>, vector<8x96xf32> -> vector<8x96xf32>
    %c0_6 = arith.constant 0 : index
    %c0_7 = arith.constant 0 : index
    %8 = vector.load %arg4[%c0_6, %c0_7] : memref<1x96xf32, #tpu.memory_space<vmem>>, vector<1x96xf32>
    %9 = vector.broadcast %8 : vector<1x96xf32> to vector<8x96xf32>
    %10 = arith.addf %7, %9 : vector<8x96xf32>
    %11 = vector.extract_strided_slice %10 {offsets = [0, 0], sizes = [8, 32], strides = [1, 1]} : vector<8x96xf32> to vector<8x32xf32>
    %12 = vector.shape_cast %11 : vector<8x32xf32> to vector<1x8x32xf32>
    %13 = arith.truncf %12 : vector<1x8x32xf32> to vector<1x8x32xbf16>
    %14 = vector.extract_strided_slice %10 {offsets = [0, 32], sizes = [8, 32], strides = [1, 1]} : vector<8x96xf32> to vector<8x32xf32>
    %15 = vector.shape_cast %14 : vector<8x32xf32> to vector<1x8x32xf32>
    %16 = arith.truncf %15 : vector<1x8x32xf32> to vector<1x8x32xbf16>
    %17 = vector.extract_strided_slice %10 {offsets = [0, 64], sizes = [8, 32], strides = [1, 1]} : vector<8x96xf32> to vector<8x32xf32>
    %18 = vector.shape_cast %17 : vector<8x32xf32> to vector<1x8x32xf32>
    %19 = arith.truncf %18 : vector<1x8x32xf32> to vector<1x8x32xbf16>
    %20 = vector.extract_strided_slice %13 {offsets = [0, 0, 0], sizes = [1, 8, 8], strides = [1, 1, 1]} : vector<1x8x32xbf16> to vector<1x8x8xbf16>
    %21 = vector.extract_strided_slice %13 {offsets = [0, 0, 8], sizes = [1, 8, 8], strides = [1, 1, 1]} : vector<1x8x32xbf16> to vector<1x8x8xbf16>
    %22 = vector.extract_strided_slice %13 {offsets = [0, 0, 16], sizes = [1, 8, 8], strides = [1, 1, 1]} : vector<1x8x32xbf16> to vector<1x8x8xbf16>
    %23 = vector.extract_strided_slice %13 {offsets = [0, 0, 24], sizes = [1, 8, 8], strides = [1, 1, 1]} : vector<1x8x32xbf16> to vector<1x8x8xbf16>
    %24 = tpu.concatenate %20, %21, %22, %23 in 0 : vector<1x8x8xbf16>, vector<1x8x8xbf16>, vector<1x8x8xbf16>, vector<1x8x8xbf16> -> vector<4x8x8xbf16>
    %25 = vector.extract_strided_slice %16 {offsets = [0, 0, 0], sizes = [1, 8, 8], strides = [1, 1, 1]} : vector<1x8x32xbf16> to vector<1x8x8xbf16>
    %26 = vector.extract_strided_slice %16 {offsets = [0, 0, 8], sizes = [1, 8, 8], strides = [1, 1, 1]} : vector<1x8x32xbf16> to vector<1x8x8xbf16>
    %27 = vector.extract_strided_slice %16 {offsets = [0, 0, 16], sizes = [1, 8, 8], strides = [1, 1, 1]} : vector<1x8x32xbf16> to vector<1x8x8xbf16>
    %28 = vector.extract_strided_slice %16 {offsets = [0, 0, 24], sizes = [1, 8, 8], strides = [1, 1, 1]} : vector<1x8x32xbf16> to vector<1x8x8xbf16>
    %29 = tpu.concatenate %25, %26, %27, %28 in 0 : vector<1x8x8xbf16>, vector<1x8x8xbf16>, vector<1x8x8xbf16>, vector<1x8x8xbf16> -> vector<4x8x8xbf16>
    %30 = vector.extract_strided_slice %19 {offsets = [0, 0, 0], sizes = [1, 8, 8], strides = [1, 1, 1]} : vector<1x8x32xbf16> to vector<1x8x8xbf16>
    %31 = vector.extract_strided_slice %19 {offsets = [0, 0, 8], sizes = [1, 8, 8], strides = [1, 1, 1]} : vector<1x8x32xbf16> to vector<1x8x8xbf16>
    %32 = vector.extract_strided_slice %19 {offsets = [0, 0, 16], sizes = [1, 8, 8], strides = [1, 1, 1]} : vector<1x8x32xbf16> to vector<1x8x8xbf16>
    %33 = vector.extract_strided_slice %19 {offsets = [0, 0, 24], sizes = [1, 8, 8], strides = [1, 1, 1]} : vector<1x8x32xbf16> to vector<1x8x8xbf16>
    %34 = tpu.concatenate %30, %31, %32, %33 in 0 : vector<1x8x8xbf16>, vector<1x8x8xbf16>, vector<1x8x8xbf16>, vector<1x8x8xbf16> -> vector<4x8x8xbf16>
    "tpu.trace_start"() <{level = 10 : i32, message = "bqd,bkd->bqk"}> : () -> ()
    %cst_8 = arith.constant dense<0.000000e+00> : vector<4x8x8xf32>
    %35 = tpu.matmul %24, %29, %cst_8 {dimension_numbers = #tpu.dot_dimension_numbers<[2], [2], [1], [1], [0, 0, 0, 1, 1, 1], [0], [0]>} : vector<4x8x8xbf16>, vector<4x8x8xbf16>, vector<4x8x8xf32> -> vector<4x8x8xf32>
    "tpu.trace_stop"() : () -> ()
    %cst_9 = arith.constant dense<0xFF800000> : vector<4x8xf32>
    %36 = vector.multi_reduction <maximumf>, %35, %cst_9 [2] : vector<4x8x8xf32> to vector<4x8xf32>
    %37 = vector.shape_cast %36 : vector<4x8xf32> to vector<4x8x1xf32>
    %38 = vector.broadcast %37 : vector<4x8x1xf32> to vector<4x8x8xf32>
    %39 = arith.subf %35, %38 : vector<4x8x8xf32>
    %40 = math.exp %39 : vector<4x8x8xf32>
    %cst_10 = arith.constant dense<0.000000e+00> : vector<4x8xf32>
    %41 = vector.multi_reduction <add>, %40, %cst_10 [2] : vector<4x8x8xf32> to vector<4x8xf32>
    %42 = vector.shape_cast %41 : vector<4x8xf32> to vector<4x8x1xf32>
    %43 = tpu.reciprocal %42 {approx = true} : vector<4x8x1xf32> -> vector<4x8x1xf32>
    %44 = vector.broadcast %43 : vector<4x8x1xf32> to vector<4x8x8xf32>
    %45 = arith.mulf %40, %44 : vector<4x8x8xf32>
    %46 = arith.truncf %45 : vector<4x8x8xf32> to vector<4x8x8xbf16>
    "tpu.trace_start"() <{level = 10 : i32, message = "bqk,bkd->bqd"}> : () -> ()
    %cst_11 = arith.constant dense<0.000000e+00> : vector<4x8x8xf32>
    %47 = tpu.matmul %46, %34, %cst_11 {dimension_numbers = #tpu.dot_dimension_numbers<[2], [1], [1], [2], [0, 0, 0, 1, 1, 2], [0], [0]>} : vector<4x8x8xbf16>, vector<4x8x8xbf16>, vector<4x8x8xf32> -> vector<4x8x8xf32>
    "tpu.trace_stop"() : () -> ()
    %48 = vector.extract_strided_slice %47 {offsets = [0, 0, 0], sizes = [1, 8, 8], strides = [1, 1, 1]} : vector<4x8x8xf32> to vector<1x8x8xf32>
    %49 = vector.shape_cast %48 : vector<1x8x8xf32> to vector<8x8xf32>
    %c0_12 = arith.constant 0 : index
    %c0_13 = arith.constant 0 : index
    %50 = vector.load %arg16[%c0_12, %c0_13] : memref<8x32xf32, #tpu.memory_space<vmem>>, vector<8x8xf32>
    tpu.vector_store %arg16[%c0_12, %c0_13], %49 {strides = array<i32>} : memref<8x32xf32, #tpu.memory_space<vmem>>, vector<8x8xf32>,
    %51 = vector.extract_strided_slice %47 {offsets = [1, 0, 0], sizes = [1, 8, 8], strides = [1, 1, 1]} : vector<4x8x8xf32> to vector<1x8x8xf32>
    %52 = vector.shape_cast %51 : vector<1x8x8xf32> to vector<8x8xf32>
    %c0_14 = arith.constant 0 : index
    %c8 = arith.constant 8 : index
    %53 = vector.load %arg16[%c0_14, %c8] : memref<8x32xf32, #tpu.memory_space<vmem>>, vector<8x8xf32>
    tpu.vector_store %arg16[%c0_14, %c8], %52 {strides = array<i32>} : memref<8x32xf32, #tpu.memory_space<vmem>>, vector<8x8xf32>,
    %54 = vector.extract_strided_slice %47 {offsets = [2, 0, 0], sizes = [1, 8, 8], strides = [1, 1, 1]} : vector<4x8x8xf32> to vector<1x8x8xf32>
    %55 = vector.shape_cast %54 : vector<1x8x8xf32> to vector<8x8xf32>
    %c0_15 = arith.constant 0 : index
    %c16 = arith.constant 16 : index
    %56 = vector.load %arg16[%c0_15, %c16] : memref<8x32xf32, #tpu.memory_space<vmem>>, vector<8x8xf32>
    tpu.vector_store %arg16[%c0_15, %c16], %55 {strides = array<i32>} : memref<8x32xf32, #tpu.memory_space<vmem>>, vector<8x8xf32>,
    %57 = vector.extract_strided_slice %47 {offsets = [3, 0, 0], sizes = [1, 8, 8], strides = [1, 1, 1]} : vector<4x8x8xf32> to vector<1x8x8xf32>
    %58 = vector.shape_cast %57 : vector<1x8x8xf32> to vector<8x8xf32>
    %c0_16 = arith.constant 0 : index
    %c24 = arith.constant 24 : index
    %59 = vector.load %arg16[%c0_16, %c24] : memref<8x32xf32, #tpu.memory_space<vmem>>, vector<8x8xf32>
    tpu.vector_store %arg16[%c0_16, %c24], %58 {strides = array<i32>} : memref<8x32xf32, #tpu.memory_space<vmem>>, vector<8x8xf32>,
    %c0_17 = arith.constant 0 : index
    %c0_18 = arith.constant 0 : index
    %60 = vector.load %arg16[%c0_17, %c0_18] : memref<8x32xf32, #tpu.memory_space<vmem>>, vector<8x32xf32>
    %61 = arith.truncf %60 : vector<8x32xf32> to vector<8x32xbf16>
    %c0_19 = arith.constant 0 : index
    %c0_20 = arith.constant 0 : index
    %62 = vector.load %arg5[%c0_19, %c0_20] : memref<32x32xbf16, #tpu.memory_space<vmem>>, vector<32x32xbf16>
    %cst_21 = arith.constant dense<0.000000e+00> : vector<8x32xf32>
    %63 = tpu.matmul %61, %62, %cst_21 {dimension_numbers = #tpu.dot_dimension_numbers<[1], [0], [0], [1], [0, 0, 1, 1], [], []>} : vector<8x32xbf16>, vector<32x32xbf16>, vector<8x32xf32> -> vector<8x32xf32>
    %c0_22 = arith.constant 0 : index
    %c0_23 = arith.constant 0 : index
    %64 = vector.load %arg6[%c0_22, %c0_23] : memref<1x32xf32, #tpu.memory_space<vmem>>, vector<1x32xf32>
    %65 = vector.broadcast %64 : vector<1x32xf32> to vector<8x32xf32>
    %66 = arith.addf %63, %65 : vector<8x32xf32>
    %67 = arith.addf %4, %66 : vector<8x32xf32>
    %cst_24 = arith.constant dense<0.000000e+00> : vector<8xf32>
    %68 = vector.multi_reduction <add>, %67, %cst_24 [1] : vector<8x32xf32> to vector<8xf32>
    %69 = vector.shape_cast %68 : vector<8xf32> to vector<8x1xf32>
    %cst_25 = arith.constant 3.200000e+01 : f32
    %70 = vector.broadcast %cst_25 : f32 to vector<8x1xf32>
    %71 = arith.divf %69, %70 : vector<8x1xf32>
    %72 = vector.broadcast %71 : vector<8x1xf32> to vector<8x32xf32>
    %73 = arith.subf %67, %72 : vector<8x32xf32>
    %74 = arith.mulf %73, %73 : vector<8x32xf32>
    %cst_26 = arith.constant dense<0.000000e+00> : vector<8xf32>
    %75 = vector.multi_reduction <add>, %74, %cst_26 [1] : vector<8x32xf32> to vector<8xf32>
    %76 = vector.shape_cast %75 : vector<8xf32> to vector<8x1xf32>
    %cst_27 = arith.constant 3.200000e+01 : f32
    %77 = vector.broadcast %cst_27 : f32 to vector<8x1xf32>
    %78 = arith.divf %76, %77 : vector<8x1xf32>
    %79 = vector.broadcast %71 : vector<8x1xf32> to vector<8x32xf32>
    %80 = arith.subf %67, %79 : vector<8x32xf32>
    %cst_28 = arith.constant 9.99999974E-6 : f32
    %81 = vector.broadcast %cst_28 : f32 to vector<8x1xf32>
    %82 = arith.addf %78, %81 : vector<8x1xf32>
    %83 = math.rsqrt %82 : vector<8x1xf32>
    %84 = vector.broadcast %83 : vector<8x1xf32> to vector<8x32xf32>
    %85 = arith.mulf %80, %84 : vector<8x32xf32>
    %c0_29 = arith.constant 0 : index
    %c0_30 = arith.constant 0 : index
    %86 = vector.load %arg11[%c0_29, %c0_30] : memref<1x32xf32, #tpu.memory_space<vmem>>, vector<1x32xf32>
    %87 = vector.broadcast %86 : vector<1x32xf32> to vector<8x32xf32>
    %88 = arith.mulf %85, %87 : vector<8x32xf32>
    %c0_31 = arith.constant 0 : index
    %c0_32 = arith.constant 0 : index
    %89 = vector.load %arg12[%c0_31, %c0_32] : memref<1x32xf32, #tpu.memory_space<vmem>>, vector<1x32xf32>
    %90 = vector.broadcast %89 : vector<1x32xf32> to vector<8x32xf32>
    %91 = arith.addf %88, %90 : vector<8x32xf32>
    %92 = arith.truncf %91 : vector<8x32xf32> to vector<8x32xbf16>
    %c0_33 = arith.constant 0 : index
    %c0_34 = arith.constant 0 : index
    %93 = vector.load %arg7[%c0_33, %c0_34] : memref<32x64xbf16, #tpu.memory_space<vmem>>, vector<32x64xbf16>
    %cst_35 = arith.constant dense<0.000000e+00> : vector<8x64xf32>
    %94 = tpu.matmul %92, %93, %cst_35 {dimension_numbers = #tpu.dot_dimension_numbers<[1], [0], [0], [1], [0, 0, 1, 1], [], []>} : vector<8x32xbf16>, vector<32x64xbf16>, vector<8x64xf32> -> vector<8x64xf32>
    %c0_36 = arith.constant 0 : index
    %c0_37 = arith.constant 0 : index
    %95 = vector.load %arg8[%c0_36, %c0_37] : memref<1x64xf32, #tpu.memory_space<vmem>>, vector<1x64xf32>
    %96 = vector.broadcast %95 : vector<1x64xf32> to vector<8x64xf32>
    %97 = arith.addf %94, %96 : vector<8x64xf32>
    %cst_38 = arith.constant 0.000000e+00 : f32
    %98 = vector.broadcast %cst_38 : f32 to vector<8x64xf32>
    %99 = arith.maximumf %97, %98 : vector<8x64xf32>
    %100 = arith.truncf %99 : vector<8x64xf32> to vector<8x64xbf16>
    %c0_39 = arith.constant 0 : index
    %c0_40 = arith.constant 0 : index
    %101 = vector.load %arg9[%c0_39, %c0_40] : memref<64x32xbf16, #tpu.memory_space<vmem>>, vector<64x32xbf16>
    %cst_41 = arith.constant dense<0.000000e+00> : vector<8x32xf32>
    %102 = tpu.matmul %100, %101, %cst_41 {dimension_numbers = #tpu.dot_dimension_numbers<[1], [0], [0], [1], [0, 0, 1, 1], [], []>} : vector<8x64xbf16>, vector<64x32xbf16>, vector<8x32xf32> -> vector<8x32xf32>
    %c0_42 = arith.constant 0 : index
    %c0_43 = arith.constant 0 : index
    %103 = vector.load %arg10[%c0_42, %c0_43] : memref<1x32xf32, #tpu.memory_space<vmem>>, vector<1x32xf32>
    %104 = vector.broadcast %103 : vector<1x32xf32> to vector<8x32xf32>
    %105 = arith.addf %102, %104 : vector<8x32xf32>
    %106 = arith.addf %91, %105 : vector<8x32xf32>
    %cst_44 = arith.constant dense<0.000000e+00> : vector<8xf32>
    %107 = vector.multi_reduction <add>, %106, %cst_44 [1] : vector<8x32xf32> to vector<8xf32>
    %108 = vector.shape_cast %107 : vector<8xf32> to vector<8x1xf32>
    %cst_45 = arith.constant 3.200000e+01 : f32
    %109 = vector.broadcast %cst_45 : f32 to vector<8x1xf32>
    %110 = arith.divf %108, %109 : vector<8x1xf32>
    %111 = vector.broadcast %110 : vector<8x1xf32> to vector<8x32xf32>
    %112 = arith.subf %106, %111 : vector<8x32xf32>
    %113 = arith.mulf %112, %112 : vector<8x32xf32>
    %cst_46 = arith.constant dense<0.000000e+00> : vector<8xf32>
    %114 = vector.multi_reduction <add>, %113, %cst_46 [1] : vector<8x32xf32> to vector<8xf32>
    %115 = vector.shape_cast %114 : vector<8xf32> to vector<8x1xf32>
    %cst_47 = arith.constant 3.200000e+01 : f32
    %116 = vector.broadcast %cst_47 : f32 to vector<8x1xf32>
    %117 = arith.divf %115, %116 : vector<8x1xf32>
    %118 = vector.broadcast %110 : vector<8x1xf32> to vector<8x32xf32>
    %119 = arith.subf %106, %118 : vector<8x32xf32>
    %cst_48 = arith.constant 9.99999974E-6 : f32
    %120 = vector.broadcast %cst_48 : f32 to vector<8x1xf32>
    %121 = arith.addf %117, %120 : vector<8x1xf32>
    %122 = math.rsqrt %121 : vector<8x1xf32>
    %123 = vector.broadcast %122 : vector<8x1xf32> to vector<8x32xf32>
    %124 = arith.mulf %119, %123 : vector<8x32xf32>
    %c0_49 = arith.constant 0 : index
    %c0_50 = arith.constant 0 : index
    %125 = vector.load %arg13[%c0_49, %c0_50] : memref<1x32xf32, #tpu.memory_space<vmem>>, vector<1x32xf32>
    %126 = vector.broadcast %125 : vector<1x32xf32> to vector<8x32xf32>
    %127 = arith.mulf %124, %126 : vector<8x32xf32>
    %c0_51 = arith.constant 0 : index
    %c0_52 = arith.constant 0 : index
    %128 = vector.load %arg14[%c0_51, %c0_52] : memref<1x32xf32, #tpu.memory_space<vmem>>, vector<1x32xf32>
    %129 = vector.broadcast %128 : vector<1x32xf32> to vector<8x32xf32>
    %130 = arith.addf %127, %129 : vector<8x32xf32>
    %131 = vector.shape_cast %130 : vector<8x32xf32> to vector<1x8x32xf32>
    %c0_53 = arith.constant 0 : index
    %c0_54 = arith.constant 0 : index
    %c0_55 = arith.constant 0 : index
    %132 = vector.load %arg15[%c0_53, %c0_54, %c0_55] : memref<1x8x32xf32, #tpu.memory_space<vmem>>, vector<1x8x32xf32>
    tpu.vector_store %arg15[%c0_53, %c0_54, %c0_55], %131 {strides = array<i32>} : memref<1x8x32xf32, #tpu.memory_space<vmem>>, vector<1x8x32xf32>,
    return
  }
  func.func @transform_0(%arg0: i32) -> (i32, i32, i32) {
    %c0_i32 = arith.constant 0 : i32
    %c0_i32_0 = arith.constant 0 : i32
    %c0_i32_1 = arith.constant 0 : i32
    return %arg0, %c0_i32, %c0_i32_0 : i32, i32, i32
  }
  func.func @transform_1(%arg0: i32) -> (i32, i32) {
    %c0_i32 = arith.constant 0 : i32
    %c0_i32_0 = arith.constant 0 : i32
    %c0_i32_1 = arith.constant 0 : i32
    return %c0_i32, %c0_i32_0 : i32, i32
  }
  func.func @transform_2(%arg0: i32) -> (i32, i32) {
    %c0_i32 = arith.constant 0 : i32
    %c0_i32_0 = arith.constant 0 : i32
    %c0_i32_1 = arith.constant 0 : i32
    return %c0_i32, %c0_i32_0 : i32, i32
  }
  func.func @transform_3(%arg0: i32) -> (i32, i32) {
    %c0_i32 = arith.constant 0 : i32
    %c0_i32_0 = arith.constant 0 : i32
    %c0_i32_1 = arith.constant 0 : i32
    return %c0_i32, %c0_i32_0 : i32, i32
  }
  func.func @transform_4(%arg0: i32) -> (i32, i32) {
    %c0_i32 = arith.constant 0 : i32
    %c0_i32_0 = arith.constant 0 : i32
    %c0_i32_1 = arith.constant 0 : i32
    return %c0_i32, %c0_i32_0 : i32, i32
  }
  func.func @transform_5(%arg0: i32) -> (i32, i32) {
    %c0_i32 = arith.constant 0 : i32
    %c0_i32_0 = arith.constant 0 : i32
    %c0_i32_1 = arith.constant 0 : i32
    return %c0_i32, %c0_i32_0 : i32, i32
  }
  func.func @transform_6(%arg0: i32) -> (i32, i32) {
    %c0_i32 = arith.constant 0 : i32
    %c0_i32_0 = arith.constant 0 : i32
    %c0_i32_1 = arith.constant 0 : i32
    return %c0_i32, %c0_i32_0 : i32, i32
  }
  func.func @transform_7(%arg0: i32) -> (i32, i32) {
    %c0_i32 = arith.constant 0 : i32
    %c0_i32_0 = arith.constant 0 : i32
    %c0_i32_1 = arith.constant 0 : i32
    return %c0_i32, %c0_i32_0 : i32, i32
  }
  func.func @transform_8(%arg0: i32) -> (i32, i32) {
    %c0_i32 = arith.constant 0 : i32
    %c0_i32_0 = arith.constant 0 : i32
    %c0_i32_1 = arith.constant 0 : i32
    return %c0_i32, %c0_i32_0 : i32, i32
  }
  func.func @transform_9(%arg0: i32) -> (i32, i32) {
    %c0_i32 = arith.constant 0 : i32
    %c0_i32_0 = arith.constant 0 : i32
    %c0_i32_1 = arith.constant 0 : i32
    return %c0_i32, %c0_i32_0 : i32, i32
  }
  func.func @transform_10(%arg0: i32) -> (i32, i32) {
    %c0_i32 = arith.constant 0 : i32
    %c0_i32_0 = arith.constant 0 : i32
    %c0_i32_1 = arith.constant 0 : i32
    return %c0_i32, %c0_i32_0 : i32, i32
  }
  func.func @transform_11(%arg0: i32) -> (i32, i32) {
    %c0_i32 = arith.constant 0 : i32
    %c0_i32_0 = arith.constant 0 : i32
    %c0_i32_1 = arith.constant 0 : i32
    return %c0_i32, %c0_i32_0 : i32, i32
  }
  func.func @transform_12(%arg0: i32) -> (i32, i32) {
    %c0_i32 = arith.constant 0 : i32
    %c0_i32_0 = arith.constant 0 : i32
    %c0_i32_1 = arith.constant 0 : i32
    return %c0_i32, %c0_i32_0 : i32, i32
  }
  func.func @transform_13(%arg0: i32) -> (i32, i32) {
    %c0_i32 = arith.constant 0 : i32
    %c0_i32_0 = arith.constant 0 : i32
    %c0_i32_1 = arith.constant 0 : i32
    return %c0_i32, %c0_i32_0 : i32, i32
  }
  func.func @transform_14(%arg0: i32) -> (i32, i32, i32) {
    %c0_i32 = arith.constant 0 : i32
    %c0_i32_0 = arith.constant 0 : i32
    %c0_i32_1 = arith.constant 0 : i32
    return %arg0, %c0_i32, %c0_i32_0 : i32, i32, i32
  }
}

</mosaic_0001>

<bundles_post_ra>
// kernel: tpu_custom_call.1
= control target key start
LH: loop header
LB: loop body
LE: loop exit
PB: predicated region body
PF: predicated region fallthrough
CT: control target
= control target key end

     0   :  { %19 = vsyncpa [#allocation4], 0  ;;  %s2201_s0 = inlined_call_operand.vmem [shape: f32[2,8,32], index: 0, kind: input, shape index: {}]   ;;  %s2202_s1 = inlined_call_operand.hbm [shape: f32[8,32], index: 1, kind: input, shape index: {}]   ;;  %s2203_s2 = inlined_call_operand.vmem [shape: bf16[32,96], index: 2, kind: input, shape index: {}]   ;;  %s2204_s3 = inlined_call_operand.vmem [shape: f32[1,96], index: 3, kind: input, shape index: {}]   ;;  %s2205_s4 = inlined_call_operand.vmem [shape: bf16[32,32], index: 4, kind: input, shape index: {}]   ;;  %s2206_s5 = inlined_call_operand.vmem [shape: f32[1,32], index: 5, kind: input, shape index: {}]   ;;  %s2207_s6 = inlined_call_operand.hbm [shape: bf16[32,64], index: 6, kind: input, shape index: {}]   ;;  %s2208_s7 = inlined_call_operand.vmem [shape: f32[1,64], index: 7, kind: input, shape index: {}]   ;;  %s2209_s8 = inlined_call_operand.vmem [shape: bf16[64,32], index: 8, kind: input, shape index: {}]   ;;  %s2210_s9 = inlined_call_operand.vmem [shape: f32[1,32], index: 9, kind: input, shape index: {}]   ;;  %s2211_s10 = inlined_call_operand.vmem [shape: f32[1,32], index: 10, kind: input, shape index: {}]   ;;  %s2212_s11 = inlined_call_operand.vmem [shape: f32[1,32], index: 11, kind: input, shape index: {}]   ;;  %s2213_s12 = inlined_call_operand.vmem [shape: f32[1,32], index: 12, kind: input, shape index: {}]   ;;  %s2214_s13 = inlined_call_operand.vmem [shape: f32[1,32], index: 13, kind: input, shape index: {}]   ;;  %s2215_s14 = inlined_call_operand.hbm [shape: f32[2,8,32], index: 14, kind: output, shape index: {}]  }
   0x1   :  { %20 = vsyncpa [#allocation7], 0 }
   0x2   :  { %21 = vsyncpa [#allocation5], 0 }
   0x3   :  { %23 = vsyncpa [#allocation5 + $0x1], 0  ;;  %s1879_s29 = smov 0   ;;  %s1881_s30 = smov 0  }
   0x4   :  { %s1883_s15 = smov 0   ;;  %s1885_s16 = smov 0  }
   0x5 LB: > { %2225 = sst [smem:[#allocation12_spill]] %s1775_s29  ;;  %s1900_s17 = sadd.s32 4294967295, %s1787_s16   ;;  %s1787_s16 = sphi %s1885_s16, %s2245_s16   ;;  %s1783_s15 = sphi %s1883_s15, %s2247_s15   ;;  %s1779_s30 = sphi %s1881_s30, %s2249_s30   ;;  %s1775_s29 = sphi %s1879_s29, %s2248_s29  }
   0x6   : > { %2226 = sst [smem:[#allocation13_spill]] %s1783_s15  ;;  %s1401_s18 = sadd.s32 4294967294, %s1787_s16  }
   0x7   : > { %2227 = sst [smem:[#allocation14_spill]] %s1787_s16  ;;  %s1904_s19 = sadd.s32 1, %s1787_s16  }
   0x8   : > { %2228 = sst [smem:[#allocation15_spill]] %s1904_s19  ;;  %s335_s20 = sadd.s32 1, %s1783_s15 }
   0x9   : > { %s332_s21 = ssub.s32 %s1787_s16, %s1904_s19  ;;  %p345_p0 = scmp.ne.s32.totalorder %s1783_s15, %s1779_s30 }
   0xa   : > { %p333_p1 = scmp.eq.s32.totalorder %s332_s21, 0  ;;  %p346_p2 = scmp.eq.s32.totalorder %s1900_s17, 1 }
   0xb   : > { %p351_p3 = scmp.ne.s32.totalorder %s1779_s30, %s1775_s29  ;;  %p352_p4 = scmp.eq.s32.totalorder %s1401_s18, 1 }
   0xc   : > { %s1915_s22 = scalar_select %p333_p1, %s1783_s15, %s335_s20  }
   0xd   : > { %p1917_p5 = por %p346_p2, %p345_p0  ;;  %p1921_p6 = por %p352_p4, %p351_p3 }
   0xe   : > { %2229 = sst [smem:[#allocation16_spill]] %s1915_s22  ;;  %p1402_p7 = scmp.ge.s32.totalorder %s1787_s16, 1 }
   0xf   : > { %s2230_s23 = scalar_select %p1917_p5, 1, 0 }
  0x10   : > { %s2231_s24 = scalar_select %p1921_p6, 1, 0 }
  0x11   : > { %p359_p8 = scmp.lt.s32.totalorder %s1787_s16, 3  ;;  %p2221_p9 = scmp.eq.s32.totalorder %s1900_s17, 0 }
  0x12   : > { %2232 = sst [smem:[#allocation17_spill]] %s2231_s24  ;;  %s1789_s26 = smov [#allocation3]  }
  0x13   : > { %p1928_p10 = pnand %p1402_p7, %p359_p8  ;;  %s372_s27 = sshll.u32 %s1789_s26, 4  ;;  %s373_s27 = int_to_ptr.vmem [resolvable:$true] %s372_s27 }
  0x14   : > { %s1790_s28 = smov [#allocation6]   ;;  %s1661_s15 = scalar_lea.hbm %s2202_s1, 128 }
  0x15   : > { %s2233_s25 = scalar_select %p1928_p10, 1, 0 }
  0x16   : > { %p1569_p11 = pneg %p1928_p10  ;;  %s394_s18 = sshll.u32 %s1790_s28, 4  ;;  %s1940_s18 = int_to_ptr.vmem [resolvable:$true] %s394_s18 }
  0x17   : > { %p1662_p13 = scmp.ne.s32.totalorder %s2202_s1, %s1661_s15  ;;  %p1668_p3 = scmp.lt.u32.totalorder %s1661_s15, %s2202_s1 }
  0x18   : > { %p1936_p12 = pnand %p2221_p9, %p1569_p11 }
  0x1a   : > { %p1663_p0 = pneg %p1936_p12 }
  0x1c   : > { %p1664_p1 = pnand %p1663_p0, %p1662_p13 }
  0x1e   : > { %p1665_p2 = pneg %p1664_p1 }
  0x20   : > { %p1670_p4 = pnand %p1668_p3, %p1665_p2 }
  0x22   : > { %1673 = shalt.err (!%p1670_p4)
}
  0x23   : > { %s1674_s29 = scalar_lea.vmem %s373_s27, 128  ;;  %p1682_p9 = scmp.lt.s32.totalorder %s373_s27, %s373_s27 }
  0x24   : > { %p1675_p7 = scmp.ne.s32.totalorder %s373_s27, %s1674_s29  ;;  %p1683_p6 = scmp.lt.s32.totalorder %s1674_s29, %s1674_s29 }
  0x26   : > { %p1677_p8 = pnand %p1675_p7, %p1663_p0  ;;  %p1684_p5 = por %p1683_p6, %p1682_p9 }
  0x28   : > { %p1678_p11 = pneg %p1677_p8 }
  0x2a   : > { %p1685_p10 = pnand %p1684_p5, %p1678_p11 }
  0x2c   : > { %1688 = shalt.err (!%p1685_p10)
}
  0x2d   : > { %1572 = dma.hbm_to_vmem [thread:$0]  (!%p1936_p12), %s2202_s1, 128, %s373_s27, [#allocation4]  }
  0x2e   : > { %s1689_s21 = scalar_lea.hbm %s2207_s6, 256 }
  0x2f   : > { %p1690_p13 = scmp.ne.s32.totalorder %s2207_s6, %s1689_s21  ;;  %p1696_p9 = scmp.lt.u32.totalorder %s1689_s21, %s2207_s6 }
  0x31   : > { %p1692_p6 = pnand %p1690_p13, %p1663_p0 }
  0x33   : > { %p1693_p5 = pneg %p1692_p6 }
  0x35   : > { %p1698_p10 = pnand %p1696_p9, %p1693_p5 }
  0x37   : > { %1701 = shalt.err (!%p1698_p10)
}
  0x38   : > { %s1702_s27 = scalar_lea.vmem %s1940_s18, 256  ;;  %p1710_p4 = scmp.lt.s32.totalorder %s1940_s18, %s1940_s18 }
  0x39   : > { %p1703_p1 = scmp.ne.s32.totalorder %s1940_s18, %s1702_s27  ;;  %p1711_p7 = scmp.lt.s32.totalorder %s1702_s27, %s1702_s27 }
  0x3b   : > { %p1705_p2 = pnand %p1703_p1, %p1663_p0  ;;  %p1712_p8 = por %p1711_p7, %p1710_p4 }
  0x3d   : > { %p1706_p3 = pneg %p1705_p2 }
  0x3f   : > { %p1713_p11 = pnand %p1712_p8, %p1706_p3 }
  0x41   : > { %1716 = shalt.err (!%p1713_p11)
}
  0x42   : > { %s1791_s16 = smov 64   ;;  %s1792_s19 = smov 4  }
  0x43   : > { %1575 = dma.hbm_to_vmem [thread:$0]  (!%p1936_p12), %s2207_s6, 256, %s1940_s18, [#allocation7], %s1791_s16, %s1791_s16, %s1792_s19  }
  0x44   : > { %p2235_p13 = scmp.ne.s32.totalorder %s2233_s25, 0 }
  0x45   : > { %p2236_p0 = scmp.eq.s32.totalorder (!%p2235_p13), %s1900_s17, 0 }
  0x46   : > { %438 = sbr.rel (%p2235_p13) target bundleno = 2711 (0xa97), region = 76 }
  0x4d   : > { %1762 = dma.done.wait (%p2236_p0), [#allocation4], 128   ;;  %p2237_p6 = pmov %p2236_p0 }
  0x4e   : > { %p2238_p5 = pmov %p2236_p0 }
  0x4f   : > { %1764 = vsyncadd (%p2237_p6), [#allocation4], 4294967168 }
  0x50   : > { %1766 = dma.done.wait (%p2238_p5), [#allocation7], 256   ;;  %p2239_p9 = pmov %p2236_p0 }
  0x51   : > { %p487_p10 = scmp.lt.s32.totalorder %s1900_s17, 1  ;;  %v1793_v0 = vmov 0.0   ;;  %vm1794_vm0 = vmmov 0   ;;  %v1631_v1 = vld [vmem:[%s2203_s2] sm:$0xff]   ;;  %v1632_v2 = vld [vmem:[%s2203_s2 + $0x8] sm:$0xff]   ;;  %vm519_vm1 = vcmask 261120  }
  0x52   : > { %1768 = vsyncadd (%p2239_p9), [#allocation7], 4294967040  ;;  %1475 = vmatprep.subr.bf16.mxu0 %v1793_v0  ;;  %1479 = vmatprep.mubr.msk.bf16.mxu0 %vm1794_vm0, %v1793_v0  ;;  %v493_v4 = vld [vmem:[#allocation3] sm:$0xff]  ;;  %v1411_v7 = vld [vmem:[%s2204_s3] ss:$0 sm:$0xff]  ;;  %s1795_s22 = smov 104  }
  0x53   : > { %s488_s25 = scalar_select %p487_p10, %s1900_s17, 1  ;;  %1483 = vmatprep.subr.bf16.mxu1 %v1793_v0  ;;  %1485 = vmatprep.mubr.msk.bf16.mxu1 %vm1794_vm0, %v1793_v0  ;;  %vm573_vm2 = vcmask 64512   ;;  %vm817_vm3 = vcmask 1043456   ;;  %vm1010_vm4 = vcmask 130112   ;;  %vm1016_vm5 = vcmask 195712  }
  0x54   : > { %1476 = vmatpush3.bf16.msra.mxu0 %v1631_v1  ;;  %s1796_s15 = smov 120   ;;  %s1799_s20 = smov 64   ;;  %vm1022_vm6 = vcmask 261312   ;;  %vm1231_vm7 = vcmask 523264  }
  0x55   : > { %s1410_s18 = sshll.u32 %s488_s25, 3  ;;  %1477 = vmatprep.subr.bf16.mxu0 %v1793_v0  ;;  %s1797_s25 = smov 96  }
  0x56   : > { %s490_s21 = scalar_lea.vmem %s2201_s0, %s1410_s18  ;;  %s1798_s18 = smov 112  }
  0x57   : > { %v492_v3 = vld [vmem:[%s490_s21] sm:$0xff]  ;;  %s1800_s29 = smov 8   ;;  %s1801_s27 = smov 16  }
  0x58   : > { %v2017_v5 = vadd.f32 %v493_v4, %v492_v3  ;;  %1478 = vmatpush3.bf16.msra.mxu0 %v1632_v2  ;;  %s1802_s16 = smov 24   ;;  %p2240_p1 = scmp.ne.s32.totalorder %s2230_s23, 0 }
  0x59   : > { %1489 = vmatprep.subr.bf16.mxu0 %v1793_v0 }
  0x5a   : > { %v495_v6 = vpack.c.bf16 %v2017_v5, %v2017_v5 }
  0x5c   : > { %1480 = vmatmul.mubr.msk.bf16.vlgmr.msra.gmra.mrb[0].mxu0 %vm519_vm1, %v495_v6 }
  0x5d   : > { %1491 = vmatprep.mubr.msk.bf16.mxu0 %vm1794_vm0, %v1793_v0 }
 0x12f   : > { %v557_v8 = vpop.f32.mrb[0].mxu0 }
 0x130   : > { %v558_v9 = vadd.f32 %v1411_v7, %v557_v8  ;;  %v1481_v10 = vpop.f32.mrb[1].mxu0 }
 0x131   : > { %v560_v11 = vpop.f32.mrb[2].mxu0 }
 0x132   : > { %v2028_v12 = vpack.c.bf16 %v558_v9, %v558_v9  ;;  %v1482_v13 = vpop.f32.mrb[3].mxu0 }
 0x134   : > { %569 = vrot.lane.b32.xlu1 %v2028_v12, %s1795_s22  ;;  %565 = vrot.lane.b32.xlu0 %v2028_v12, %s1796_s15 }
 0x138   : > { %571 = vrot.lane.b32.xlu1 %v2028_v12, %s1797_s25  ;;  %567 = vrot.lane.b32.xlu0 %v2028_v12, %s1798_s18 }
 0x1a6   : > { %v2034_v14 = vpop.permute.xlu1 %569  ;;  %v566_v15 = vpop.permute.xlu0 %565 }
 0x1a7   : > { %620 = vrot.lane.b32.xlu0 %v566_v15, %s1797_s25 }
 0x1aa   : > { %v572_v16 = vpop.permute.xlu1 %571  ;;  %v2036_v17 = vpop.permute.xlu0 %567 }
 0x1ab   : > { %716 = vrot.lane.b32.xlu0 %v2034_v14, %s1797_s25  ;;  %668 = vrot.lane.b32.xlu1 %v2036_v17, %s1797_s25  ;;  %v578_v18 = vsel %vm573_vm2, %v572_v16, 0 }
 0x1ac   : > { %1484 = vmatpush3.bf16.xpose.msra.mxu1 %v578_v18 }
 0x1ad   : > { %1495 = vmatprep.subr.bf16.mxu1 %v1793_v0 }
 0x1b3   : > { %1486 = vmatmul.mubr.msk.bf16.vlgmr.msra.gmra.mrb[0].mxu1 %vm573_vm2, %v2028_v12 }
 0x1b4   : > { %1497 = vmatprep.mubr.msk.bf16.mxu1 %vm1794_vm0, %v1793_v0 }
 0x219   : > { %v621_v19 = vpop.permute.xlu0 %620 }
 0x21a   : > { %v626_v20 = vsel %vm573_vm2, %v621_v19, 0 }
 0x21b   : > { %1490 = vmatpush3.bf16.xpose.msra.mxu0 %v626_v20 }
 0x21c   : > { %1501 = vmatprep.subr.bf16.mxu0 %v1793_v0 }
 0x21d   : > { %v669_v21 = vpop.permute.xlu1 %668  ;;  %v717_v23 = vpop.permute.xlu0 %716 }
 0x21e   : > { %v674_v22 = vsel %vm573_vm2, %v669_v21, 0  ;;  %v722_v24 = vsel %vm573_vm2, %v717_v23, 0 }
 0x21f   : > { %1496 = vmatpush3.bf16.xpose.msra.mxu1 %v674_v22 }
 0x220   : > { %1507 = vmatprep.subr.bf16.mxu1 %v1793_v0 }
 0x222   : > { %1492 = vmatmul.mubr.msk.bf16.vlgmr.msra.gmra.mrb[4].mxu0 %vm573_vm2, %v566_v15 }
 0x223   : > { %1502 = vmatpush3.bf16.xpose.msra.mxu0 %v722_v24  ;;  %1503 = vmatprep.mubr.msk.bf16.mxu0 %vm1794_vm0, %v1793_v0 }
 0x224   : > { %1513 = vmatprep.subr.bf16.mxu0 %v1793_v0 }
 0x226   : > { %1498 = vmatmul.mubr.msk.bf16.vlgmr.msra.gmra.mrb[4].mxu1 %vm573_vm2, %v2036_v17 }
 0x227   : > { %1509 = vmatprep.mubr.msk.bf16.mxu1 %vm1794_vm0, %v1793_v0 }
 0x22a   : > { %1504 = vmatmul.mubr.msk.bf16.vlgmr.msra.gmra.mrb[8].mxu0 %vm573_vm2, %v2034_v14 }
 0x22b   : > { %1515 = vmatprep.mubr.msk.bf16.mxu0 %vm1794_vm0, %v1793_v0 }
 0x286   : > { %v614_v25 = vpop.f32.mrb[0].mxu1 }
 0x287   : > { %v1487_v26 = vpop.f32.mrb[1].mxu1  ;;  %v764_v27 = vsel %vm573_vm2, %v614_v25, -inf }
 0x288   : > { %v617_v28 = vpop.f32.mrb[2].mxu1  ;;  %765 = vmax.xlane.f32.xlu1 %v764_v27 }
 0x289   : > { %v1488_v29 = vpop.f32.mrb[3].mxu1 }
 0x2f5   : > { %v662_v30 = vpop.f32.mrb[4].mxu0 }
 0x2f6   : > { %v1493_v31 = vpop.f32.mrb[5].mxu0  ;;  %v767_v32 = vsel %vm573_vm2, %v662_v30, -inf }
 0x2f7   : > { %768 = vmax.xlane.f32.xlu0 %v767_v32  ;;  %v665_v33 = vpop.f32.mrb[6].mxu0  ;;  %v1633_v31 = vld [vmem:[%s2205_s4] sm:$0xff]   ;;  %v1634_v32 = vld [vmem:[%s2205_s4 + $0x8] sm:$0xff]  }
 0x2f8   : > { %v1494_v34 = vpop.f32.mrb[7].mxu0 }
 0x2f9   : > { %v710_v35 = vpop.f32.mrb[4].mxu1 }
 0x2fa   : > { %v1499_v36 = vpop.f32.mrb[5].mxu1  ;;  %v770_v37 = vsel %vm573_vm2, %v710_v35, -inf }
 0x2fb   : > { %v713_v38 = vpop.f32.mrb[6].mxu1  ;;  %771 = vmax.xlane.f32.xlu0 %v770_v37 }
 0x2fc   : > { %v1500_v39 = vpop.f32.mrb[7].mxu1 }
 0x2fd   : > { %v758_v40 = vpop.f32.mrb[8].mxu0 }
 0x2fe   : > { %v1505_v41 = vpop.f32.mrb[9].mxu0  ;;  %v773_v42 = vsel %vm573_vm2, %v758_v40, -inf }
 0x2ff   : > { %774 = vmax.xlane.f32.xlu1 %v773_v42  ;;  %v761_v43 = vpop.f32.mrb[10].mxu0 }
 0x300   : > { %v1506_v44 = vpop.f32.mrb[11].mxu0 }
 0x310   : > { %861 = vrot.lane.b32.xlu1 %v566_v15, %s1799_s20 }
 0x311   : > { %812 = vrot.lane.b32.xlu0 %v2028_v12, %s1799_s20 }
 0x315   : > { %v766_v45 = vpop.xlane.xlu1 %765 }
 0x316   : > { %v776_v46 = vsub.f32 %v614_v25, %v766_v45 }
 0x318   : > { %v780_v47 = vmul.f32 1.442695, %v776_v46 }
 0x31a   : > { %1641 = vpow2.f32 %v780_v47 }
 0x324   : > { %v1642_v48 = vpop.eup %1641 }
 0x325   : > { %v788_v49 = vsel %vm573_vm2, %v1642_v48, 0.0 }
 0x330   : > { %789 = vadd.xlane.f32.xlu0 %v788_v49 }
 0x384   : > { %v769_v50 = vpop.xlane.xlu0 %768 }
 0x385   : > { %v777_v51 = vsub.f32 %v662_v30, %v769_v50  ;;  %v1423_v50 = vld [vmem:[%s2206_s5] ss:$0 sm:$0xff] }
 0x387   : > { %v782_v52 = vmul.f32 1.442695, %v777_v51 }
 0x388   : > { %v772_v53 = vpop.xlane.xlu0 %771 }
 0x389   : > { %1643 = vpow2.f32 %v782_v52  ;;  %v778_v54 = vsub.f32 %v710_v35, %v772_v53 }
 0x38b   : > { %v784_v55 = vmul.f32 1.442695, %v778_v54 }
 0x38c   : > { %v813_v56 = vpop.permute.xlu0 %812  ;;  %v775_v57 = vpop.xlane.xlu1 %774 }
 0x38d   : > { %1645 = vpow2.f32 %v784_v55  ;;  %v819_v58 = vsel %vm817_vm3, %v813_v56, 0  ;;  %v779_v59 = vsub.f32 %v758_v40, %v775_v57 }
 0x38e   : > { %1508 = vmatpush3.bf16.msra.mxu1 %v819_v58 }
 0x38f   : > { %v786_v60 = vmul.f32 1.442695, %v779_v59  ;;  %1519 = vmatprep.subr.bf16.mxu1 %v1793_v0 }
 0x390   : > { %v862_v61 = vpop.permute.xlu1 %861 }
 0x391   : > { %1647 = vpow2.f32 %v786_v60  ;;  %v867_v62 = vsel %vm817_vm3, %v862_v61, 0 }
 0x392   : > { %1514 = vmatpush3.bf16.msra.mxu0 %v867_v62 }
 0x393   : > { %v1644_v63 = vpop.eup %1643  ;;  %1525 = vmatprep.subr.bf16.mxu0 %v1793_v0 }
 0x394   : > { %v791_v1 = vsel %vm573_vm2, %v1644_v63, 0.0 }
 0x395   : > { %792 = vadd.xlane.f32.xlu1 %v791_v1  ;;  %v1636_v1 = vld [vmem:[#allocation6 + $0x8] sm:$0xff]  }
 0x397   : > { %v1646_v2 = vpop.eup %1645 }
 0x398   : > { %v794_v3 = vsel %vm573_vm2, %v1646_v2, 0.0 }
 0x399   : > { %795 = vadd.xlane.f32.xlu0 %v794_v3 }
 0x39b   : > { %v1648_v4 = vpop.eup %1647 }
 0x39c   : > { %v797_v6 = vsel %vm573_vm2, %v1648_v4, 0.0 }
 0x39d   : > { %798 = vadd.xlane.f32.xlu1 %v797_v6 }
 0x3ae   : > { %909 = vrot.lane.b32.xlu1 %v2036_v17, %s1799_s20 }
 0x3af   : > { %957 = vrot.lane.b32.xlu0 %v2034_v14, %s1799_s20  ;;  %s484_s20 = sand.u32 1, %s1779_s30  }
 0x3b0   : > { %s1409_s24 = sshll.u32 %s484_s20, 3  ;;  %s1307_s18 = scalar_lea.sflag [#allocation5], %s484_s20 }
 0x3bd   : > { %v790_v7 = vpop.xlane.xlu0 %789 }
 0x3be   : > { %1649 = vrcp.f32 %v790_v7 }
 0x3c8   : > { %v1650_v8 = vpop.eup %1649 }
 0x3c9   : > { %v804_v9 = vmul.f32 %v1650_v8, %v1642_v48  ;;  %v1427_v8 = vld [vmem:[%s2211_s10] ss:$0 sm:$0xff] }
 0x3cb   : > { %v808_v10 = vpack.c.bf16 %v804_v9, %v804_v9 }
 0x3cd   : > { %1510 = vmatmul.mubr.msk.bf16.vlgmr.msra.gmra.mrb[8].mxu1 %vm573_vm2, %v808_v10  ;;  %v1428_v10 = vld [vmem:[%s2212_s11] ss:$0 sm:$0xff] }
 0x3ce   : > { %1521 = vmatprep.mubr.msk.bf16.mxu1 %vm1794_vm0, %v1793_v0 }
 0x422   : > { %v793_v11 = vpop.xlane.xlu1 %792 }
 0x423   : > { %1651 = vrcp.f32 %v793_v11 }
 0x426   : > { %v796_v12 = vpop.xlane.xlu0 %795 }
 0x427   : > { %1653 = vrcp.f32 %v796_v12 }
 0x42a   : > { %v799_v13 = vpop.xlane.xlu1 %798  ;;  %v958_v14 = vpop.permute.xlu0 %957 }
 0x42b   : > { %1655 = vrcp.f32 %v799_v13  ;;  %v963_v22 = vsel %vm817_vm3, %v958_v14, 0 }
 0x42d   : > { %v1652_v15 = vpop.eup %1651 }
 0x42e   : > { %v805_v16 = vmul.f32 %v1652_v15, %v1644_v63  ;;  %v910_v17 = vpop.permute.xlu1 %909  ;;  %v1635_v63 = vld [vmem:[#allocation6] sm:$0xff]  }
 0x42f   : > { %v915_v18 = vsel %vm817_vm3, %v910_v17, 0  ;;  %v1639_v15 = vld [vmem:[%s2209_s8 + $0x10] sm:$0xff]   ;;  %v1429_v17 = vld [vmem:[%s2208_s7] ss:$0 sm:$0xff] }
 0x430   : > { %1520 = vmatpush3.bf16.msra.mxu1 %v915_v18  ;;  %v809_v19 = vpack.c.bf16 %v805_v16, %v805_v16  ;;  %v1640_v16 = vld [vmem:[%s2209_s8 + $0x18] sm:$0xff]  }
 0x431   : > { %v1654_v20 = vpop.eup %1653  ;;  %1531 = vmatprep.subr.bf16.mxu1 %v1793_v0 }
 0x432   : > { %v806_v21 = vmul.f32 %v1654_v20, %v1646_v2  ;;  %1516 = vmatmul.mubr.msk.bf16.vlgmr.msra.gmra.mrb[12].mxu0 %vm573_vm2, %v809_v19  ;;  %v1638_v2 = vld [vmem:[%s2209_s8 + $0x8] sm:$0xff]  }
 0x433   : > { %1526 = vmatpush3.bf16.msra.mxu0 %v963_v22  ;;  %1527 = vmatprep.mubr.msk.bf16.mxu0 %vm1794_vm0, %v1793_v0 }
 0x434   : > { %v810_v23 = vpack.c.bf16 %v806_v21, %v806_v21  ;;  %1539 = vmatprep.subr.bf16.mxu0 %v1793_v0 }
 0x435   : > { %v1656_v24 = vpop.eup %1655 }
 0x436   : > { %v807_v25 = vmul.f32 %v1656_v24, %v1648_v4  ;;  %1522 = vmatmul.mubr.msk.bf16.vlgmr.msra.gmra.mrb[12].mxu1 %vm573_vm2, %v810_v23 }
 0x437   : > { %1535 = vmatprep.mubr.msk.bf16.mxu1 %vm1794_vm0, %v1793_v0  ;;  %1532 = vmatpush3.bf16.msra.mxu1 %v1633_v31 }
 0x438   : > { %v811_v26 = vpack.c.bf16 %v807_v25, %v807_v25  ;;  %1533 = vmatprep.subr.bf16.mxu1 %v1793_v0 }
 0x43a   : > { %1528 = vmatmul.mubr.msk.bf16.vlgmr.msra.gmra.mrb[16].mxu0 %vm573_vm2, %v811_v26 }
 0x43b   : > { %1543 = vmatprep.mubr.msk.bf16.mxu0 %vm1794_vm0, %v1793_v0  ;;  %1534 = vmatpush3.bf16.msra.mxu1 %v1634_v32 }
 0x43c   : > { %1547 = vmatprep.subr.bf16.mxu1 %v1793_v0  ;;  %1540 = vmatpush3.bf16.msra.mxu0 %v1635_v63 }
 0x43d   : > { %1541 = vmatprep.subr.bf16.mxu0 %v1793_v0 }
 0x440   : > { %1542 = vmatpush3.bf16.msra.mxu0 %v1636_v1 }
 0x4a0   : > { %v855_v27 = vpop.f32.mrb[8].mxu1 }
 0x4a1   : > { %1005 = vst.msk [vmem:[#allocation2] sm:$0xff] %vm573_vm2, %v855_v27  ;;  %v1511_v28 = vpop.f32.mrb[9].mxu1 }
 0x4a2   : > { %v858_v29 = vpop.f32.mrb[10].mxu1 }
 0x4a3   : > { %v1512_v30 = vpop.f32.mrb[11].mxu1 }
 0x505   : > { %v903_v33 = vpop.f32.mrb[12].mxu0 }
 0x506   : > { %1007 = vrot.lane.b32.xlu1 %v903_v33, %s1800_s29  ;;  %v1517_v34 = vpop.f32.mrb[13].mxu0 }
 0x507   : > { %v906_v35 = vpop.f32.mrb[14].mxu0 }
 0x508   : > { %v1518_v36 = vpop.f32.mrb[15].mxu0 }
 0x509   : > { %v951_v37 = vpop.f32.mrb[12].mxu1 }
 0x50a   : > { %1013 = vrot.lane.b32.xlu0 %v951_v37, %s1801_s27  ;;  %v1523_v38 = vpop.f32.mrb[13].mxu1  ;;  %s1442_s27 = sshll.u32 %s1900_s17, 7  ;;  %s1803_s17 = smov [#allocation8]  }
 0x50b   : > { %v954_v39 = vpop.f32.mrb[14].mxu1  ;;  %s2158_s25 = scalar_lea.hbm %s2215_s14, %s1442_s27 }
 0x50c   : > { %v1524_v40 = vpop.f32.mrb[15].mxu1 }
 0x50d   : > { %v999_v41 = vpop.f32.mrb[16].mxu0  ;;  %v1439_v40 = vld [vmem:[%s2213_s12] ss:$0 sm:$0xff] }
 0x50e   : > { %1019 = vrot.lane.b32.xlu1 %v999_v41, %s1802_s16  ;;  %v1529_v42 = vpop.f32.mrb[17].mxu0  ;;  %s486_s16 = scalar_lea.vmem [#allocation8], %s1409_s24  ;;  %s1721_s24 = sshll.u32 %s1803_s17, 4  ;;  %s1722_s24 = int_to_ptr.vmem [resolvable:$false] %s1721_s24 }
 0x50f   : > { %v1002_v43 = vpop.f32.mrb[18].mxu0  ;;  %v1440_v42 = vld [vmem:[%s2214_s13] ss:$0 sm:$0xff]  ;;  %s1320_s19 = sshll.u32 %s486_s16, 4  ;;  %s1723_s26 = scalar_lea.vmem %s1722_s24, 256  ;;  %s2160_s19 = int_to_ptr.vmem [resolvable:$true] %s1320_s19 }
 0x510   : > { %v1530_v44 = vpop.f32.mrb[19].mxu0  ;;  %s1717_s21 = scalar_lea.vmem %s2160_s19, 128  ;;  %p1724_p4 = scmp.lt.s32.totalorder %s2160_s19, %s1722_s24 }
 0x511   : > { %p1718_p12 = scmp.ne.s32.totalorder %s2160_s19, %s1717_s21  ;;  %p1725_p7 = scmp.lt.s32.totalorder %s1723_s26, %s1717_s21 }
 0x513   : > { %p1719_p2 = pnand %p1718_p12, %p2240_p1  ;;  %p1726_p8 = por %p1725_p7, %p1724_p4 }
 0x515   : > { %p1720_p3 = pneg %p1719_p2 }
 0x517   : > { %p1727_p11 = pnand %p1726_p8, %p1720_p3 }
 0x578   : > { %v1008_v45 = vpop.permute.xlu1 %1007 }
 0x579   : > { %1011 = vst.msk [vmem:[#allocation2] sm:$0xff] %vm1010_vm4, %v1008_v45 }
 0x57c   : > { %v1014_v46 = vpop.permute.xlu0 %1013 }
 0x57d   : > { %1017 = vst.msk [vmem:[#allocation2] sm:$0xff] %vm1016_vm5, %v1014_v46 }
 0x580   : > { %v1020_v47 = vpop.permute.xlu1 %1019 }
 0x581   : > { %1023 = vst.msk [vmem:[#allocation2] sm:$0xff] %vm1022_vm6, %v1020_v47 }
 0x588   : > { %v1024_v48 = vld [vmem:[#allocation2] sm:$0xff] }
 0x589   : > { %v1025_v49 = vpack.c.bf16 %v1024_v48, %v1024_v48 }
 0x58b   : > { %1536 = vmatmul.mubr.msk.bf16.vlgmr.msra.gmra.mrb[16].mxu1 %vm519_vm1, %v1025_v49 }
 0x58c   : > { %1555 = vmatprep.mubr.msk.bf16.mxu1 %vm1794_vm0, %v1793_v0 }
 0x65e   : > { %v1086_v51 = vpop.f32.mrb[16].mxu1 }
 0x65f   : > { %v1087_v52 = vadd.f32 %v1423_v50, %v1086_v51  ;;  %v1537_v53 = vpop.f32.mrb[17].mxu1 }
 0x660   : > { %v1089_v54 = vpop.f32.mrb[18].mxu1 }
 0x661   : > { %v1538_v55 = vpop.f32.mrb[19].mxu1  ;;  %v1092_v56 = vadd.f32 %v1087_v52, %v2017_v5  ;;  %v1637_v5 = vld [vmem:[%s2209_s8] sm:$0xff]  }
 0x662   : > { %1548 = vmatpush3.bf16.msra.mxu1 %v1637_v5 }
 0x663   : > { %v1093_v57 = vsel %vm519_vm1, %v1092_v56, 0.0  ;;  %1549 = vmatprep.subr.bf16.mxu1 %v1793_v0 }
 0x664   : > { %1094 = vadd.xlane.f32.xlu0 %v1093_v57 }
 0x666   : > { %1550 = vmatpush3.bf16.msra.mxu1 %v1638_v2 }
 0x667   : > { %1551 = vmatprep.subr.bf16.mxu1 %v1793_v0 }
 0x66a   : > { %1552 = vmatpush3.bf16.msra.mxu1 %v1639_v15 }
 0x66b   : > { %1553 = vmatprep.subr.bf16.mxu1 %v1793_v0  ;;  %v1433_v0 = vld [vmem:[%s2210_s9] ss:$0 sm:$0xff] }
 0x66e   : > { %1554 = vmatpush3.bf16.msra.mxu1 %v1640_v16 }
 0x6f1   : > { %v1095_v58 = vpop.xlane.xlu0 %1094 }
 0x6f2   : > { %v1097_v59 = vmul.f32 0.03125, %v1095_v58 }
 0x6f4   : > { %v1098_v60 = vsub.f32 %v1092_v56, %v1097_v59 }
 0x6f6   : > { %v1099_v61 = vmul.f32 %v1098_v60, %v1098_v60 }
 0x6f8   : > { %v1100_v62 = vsel %vm519_vm1, %v1099_v61, 0.0 }
 0x6f9   : > { %1101 = vadd.xlane.f32.xlu1 %v1100_v62 }
 0x786   : > { %v1102_v3 = vpop.xlane.xlu1 %1101 }
 0x787   : > { %v1103_v4 = vmul.f32 0.03125, %v1102_v3 }
 0x789   : > { %v1104_v6 = vadd.f32 1e-05, %v1103_v4 }
 0x78b   : > { %1657 = vrsqrt.f32 %v1104_v6 }
 0x795   : > { %v1658_v7 = vpop.eup %1657 }
 0x796   : > { %v1106_v9 = vmul.f32 %v1658_v7, %v1098_v60 }
 0x798   : > { %v1114_v11 = vmul.f32 %v1427_v8, %v1106_v9 }
 0x79a   : > { %v1122_v12 = vadd.f32 %v1428_v10, %v1114_v11 }
 0x79c   : > { %v1123_v13 = vpack.c.bf16 %v1122_v12, %v1122_v12 }
 0x79e   : > { %1544 = vmatmul.mubr.msk.bf16.vlgmr.msra.gmra.mrb[20].mxu0 %vm519_vm1, %v1123_v13 }
 0x871   : > { %v1184_v14 = vpop.f32.mrb[20].mxu0 }
 0x872   : > { %v1185_v18 = vadd.f32 %v1429_v17, %v1184_v14  ;;  %v1545_v19 = vpop.f32.mrb[21].mxu0 }
 0x873   : > { %v1187_v20 = vpop.f32.mrb[22].mxu0 }
 0x874   : > { %v1190_v21 = vmax.f32 %v1185_v18, 0.0  ;;  %v1546_v22 = vpop.f32.mrb[23].mxu0 }
 0x876   : > { %v1191_v23 = vpack.c.bf16 %v1190_v21, %v1190_v21 }
 0x878   : > { %1556 = vmatmul.mubr.msk.bf16.vlgmr.msra.gmra.mrb[20].mxu1 %vm1231_vm7, %v1191_v23 }
 0x94b   : > { %v1269_v24 = vpop.f32.mrb[20].mxu1 }
 0x94c   : > { %v1270_v25 = vadd.f32 %v1433_v0, %v1269_v24  ;;  %v1557_v26 = vpop.f32.mrb[21].mxu1 }
 0x94d   : > { %v1272_v27 = vpop.f32.mrb[22].mxu1 }
 0x94e   : > { %v1558_v28 = vpop.f32.mrb[23].mxu1  ;;  %v1275_v29 = vadd.f32 %v1270_v25, %v1122_v12 }
 0x950   : > { %v1276_v30 = vsel %vm519_vm1, %v1275_v29, 0.0 }
 0x951   : > { %1277 = vadd.xlane.f32.xlu0 %v1276_v30 }
 0x9de   : > { %v1278_v31 = vpop.xlane.xlu0 %1277 }
 0x9df   : > { %v1279_v32 = vmul.f32 0.03125, %v1278_v31 }
 0x9e1   : > { %v1280_v33 = vsub.f32 %v1275_v29, %v1279_v32 }
 0x9e3   : > { %v1281_v34 = vmul.f32 %v1280_v33, %v1280_v33 }
 0x9e5   : > { %v1282_v35 = vsel %vm519_vm1, %v1281_v34, 0.0 }
 0x9e6   : > { %1283 = vadd.xlane.f32.xlu0 %v1282_v35 }
 0xa73   : > { %v1284_v36 = vpop.xlane.xlu0 %1283 }
 0xa74   : > { %v1285_v37 = vmul.f32 0.03125, %v1284_v36 }
 0xa76   : > { %v1286_v38 = vadd.f32 1e-05, %v1285_v37 }
 0xa78   : > { %1659 = vrsqrt.f32 %v1286_v38 }
 0xa82   : > { %v1660_v39 = vpop.eup %1659 }
 0xa83   : > { %v1288_v41 = vmul.f32 %v1660_v39, %v1280_v33 }
 0xa85   : > { %v1296_v43 = vmul.f32 %v1439_v40, %v1288_v41 }
 0xa87   : > { %v1304_v44 = vadd.f32 %v1440_v42, %v1296_v43 }
 0xa89   : > { %1305 = vst.msk [vmem:[%s486_s16] sm:$0xff] %vm519_vm1, %v1304_v44 }
 0xa8a   : > { %1730 = shalt.err (!%p1727_p11)
}
 0xa8b   : > { %s1731_s20 = scalar_lea.hbm %s2158_s25, 128  ;;  %s1735_s27 = scalar_lea.hbm %s2215_s14, 256 }
 0xa8c   : > { %p1732_p13 = scmp.ne.s32.totalorder %s2158_s25, %s1731_s20  ;;  %p1736_p5 = scmp.lt.u32.totalorder %s2158_s25, %s2215_s14 }
 0xa8d   : > { %p1737_p9 = scmp.lt.u32.totalorder %s1735_s27, %s1731_s20  ;;  %p1739_p12 = scmp.lt.u32.totalorder %s1731_s20, %s2158_s25 }
 0xa8e   : > { %p1733_p0 = pnand %p1732_p13, %p2240_p1 }
 0xa8f   : > { %p1738_p10 = por %p1737_p9, %p1736_p5 }
 0xa90   : > { %p1734_p6 = pneg %p1733_p0 }
 0xa91   : > { %p1740_p2 = por %p1739_p12, %p1738_p10 }
 0xa93   : > { %p1741_p3 = pnand %p1740_p2, %p1734_p6 }
 0xa95   : > { %1744 = shalt.err (!%p1741_p3)
}
 0xa96   : > { %1567 = dma.vmem_to_hbm [thread:$0]  (%p2240_p1), %s2160_s19, 128, %s2158_s25, %s1307_s18  }
 0xa97 PF: > { %s2241_s15 = sld [smem:[#allocation14_spill]]  ;;  %s2242_s21 = sld [smem:[#allocation12_spill]] }
 0xa98   : > { %s2243_s17 = sld [smem:[#allocation17_spill]] }
 0xa9d   : > { %p1584_p4 = scmp.ge.s32.totalorder %s2241_s15, 2  ;;  %s1332_s24 = sand.u32 1, %s2242_s21  }
 0xa9e   : > { %p2244_p7 = scmp.ne.s32.totalorder %s2243_s17, 0  ;;  %s1333_s26 = scalar_lea.sflag [#allocation5], %s1332_s24 }
 0xaa0   : > { %p1577_p8 = pnand %p1584_p4, %p2244_p7 }
 0xaa2   : > { %1770 = dma.done.wait (!%p1577_p8), %s1333_s26, 128  }
 0xaa3   : > { %1772 = vsyncadd (!%p1577_p8), %s1333_s26, 4294967168  ;;  %s2245_s16 = sld [smem:[#allocation15_spill]]  ;;  %s2246_s20 = sld [smem:[#allocation13_spill]] }
 0xaa4   : > { %s2247_s15 = sld [smem:[#allocation16_spill]]  ;;  %s2248_s29 = smov %s1779_s30 }
 0xaa9   : > { %p26_p11 = scmp.ge.s32.totalorder %s2245_s16, 4   ;;  %s2249_s30 = smov %s2246_s20 }
 0xaab   :  { %28 = sbr.rel (!%p26_p11) target bundleno = 5 (0x5), region = 120 }
 0xab2   :  { %1338 = vsyncpa [#allocation4], 1 }
 0xab3   :  { %1340 = vsyncpa [#allocation4 + $0x1], 1 }
 0xab4   :  { %1341 = vsyncpa [#allocation7], 1 }
 0xab5   :  { %1342 = vsyncpa [#allocation5], 1 }
 0xab6   :  { %1344 = vsyncpa [#allocation5 + $0x1], 1 }

// kernel: tpu_custom_call.1
= control target key start
LH: loop header
LB: loop body
LE: loop exit
PB: predicated region body
PF: predicated region fallthrough
CT: control target
= control target key end

     0   :  { %19 = vsyncpa [#allocation4], 0  ;;  %s2201_s0 = inlined_call_operand.vmem [shape: f32[2,8,32], index: 0, kind: input, shape index: {}]   ;;  %s2202_s1 = inlined_call_operand.hbm [shape: f32[8,32], index: 1, kind: input, shape index: {}]   ;;  %s2203_s2 = inlined_call_operand.vmem [shape: bf16[32,96], index: 2, kind: input, shape index: {}]   ;;  %s2204_s3 = inlined_call_operand.vmem [shape: f32[1,96], index: 3, kind: input, shape index: {}]   ;;  %s2205_s4 = inlined_call_operand.vmem [shape: bf16[32,32], index: 4, kind: input, shape index: {}]   ;;  %s2206_s5 = inlined_call_operand.vmem [shape: f32[1,32], index: 5, kind: input, shape index: {}]   ;;  %s2207_s6 = inlined_call_operand.hbm [shape: bf16[32,64], index: 6, kind: input, shape index: {}]   ;;  %s2208_s7 = inlined_call_operand.vmem [shape: f32[1,64], index: 7, kind: input, shape index: {}]   ;;  %s2209_s8 = inlined_call_operand.vmem [shape: bf16[64,32], index: 8, kind: input, shape index: {}]   ;;  %s2210_s9 = inlined_call_operand.vmem [shape: f32[1,32], index: 9, kind: input, shape index: {}]   ;;  %s2211_s10 = inlined_call_operand.vmem [shape: f32[1,32], index: 10, kind: input, shape index: {}]   ;;  %s2212_s11 = inlined_call_operand.vmem [shape: f32[1,32], index: 11, kind: input, shape index: {}]   ;;  %s2213_s12 = inlined_call_operand.vmem [shape: f32[1,32], index: 12, kind: input, shape index: {}]   ;;  %s2214_s13 = inlined_call_operand.vmem [shape: f32[1,32], index: 13, kind: input, shape index: {}]   ;;  %s2215_s14 = inlined_call_operand.hbm [shape: f32[2,8,32], index: 14, kind: output, shape index: {}]  }
   0x1   :  { %20 = vsyncpa [#allocation7], 0 }
   0x2   :  { %21 = vsyncpa [#allocation5], 0 }
   0x3   :  { %23 = vsyncpa [#allocation5 + $0x1], 0  ;;  %s1879_s29 = smov 0   ;;  %s1881_s30 = smov 0  }
   0x4   :  { %s1883_s15 = smov 0   ;;  %s1885_s16 = smov 0  }
   0x5 LB: > { %2225 = sst [smem:[#allocation12_spill]] %s1775_s29  ;;  %s1900_s17 = sadd.s32 4294967295, %s1787_s16   ;;  %s1787_s16 = sphi %s1885_s16, %s2245_s16   ;;  %s1783_s15 = sphi %s1883_s15, %s2247_s15   ;;  %s1779_s30 = sphi %s1881_s30, %s2249_s30   ;;  %s1775_s29 = sphi %s1879_s29, %s2248_s29  }
   0x6   : > { %2226 = sst [smem:[#allocation13_spill]] %s1783_s15  ;;  %s1401_s18 = sadd.s32 4294967294, %s1787_s16  }
   0x7   : > { %2227 = sst [smem:[#allocation14_spill]] %s1787_s16  ;;  %s1904_s19 = sadd.s32 1, %s1787_s16  }
   0x8   : > { %2228 = sst [smem:[#allocation15_spill]] %s1904_s19  ;;  %s335_s20 = sadd.s32 1, %s1783_s15 }
   0x9   : > { %s332_s21 = ssub.s32 %s1787_s16, %s1904_s19  ;;  %p345_p0 = scmp.ne.s32.totalorder %s1783_s15, %s1779_s30 }
   0xa   : > { %p333_p1 = scmp.eq.s32.totalorder %s332_s21, 0  ;;  %p346_p2 = scmp.eq.s32.totalorder %s1900_s17, 1 }
   0xb   : > { %p351_p3 = scmp.ne.s32.totalorder %s1779_s30, %s1775_s29  ;;  %p352_p4 = scmp.eq.s32.totalorder %s1401_s18, 1 }
   0xc   : > { %s1915_s22 = scalar_select %p333_p1, %s1783_s15, %s335_s20  }
   0xd   : > { %p1917_p5 = por %p346_p2, %p345_p0  ;;  %p1921_p6 = por %p352_p4, %p351_p3 }
   0xe   : > { %2229 = sst [smem:[#allocation16_spill]] %s1915_s22  ;;  %p1402_p7 = scmp.ge.s32.totalorder %s1787_s16, 1 }
   0xf   : > { %s2230_s23 = scalar_select %p1917_p5, 1, 0 }
  0x10   : > { %s2231_s24 = scalar_select %p1921_p6, 1, 0 }
  0x11   : > { %p359_p8 = scmp.lt.s32.totalorder %s1787_s16, 3  ;;  %p2221_p9 = scmp.eq.s32.totalorder %s1900_s17, 0 }
  0x12   : > { %2232 = sst [smem:[#allocation17_spill]] %s2231_s24  ;;  %s1789_s26 = smov [#allocation3]  }
  0x13   : > { %p1928_p10 = pnand %p1402_p7, %p359_p8  ;;  %s372_s27 = sshll.u32 %s1789_s26, 4  ;;  %s373_s27 = int_to_ptr.vmem [resolvable:$true] %s372_s27 }
  0x14   : > { %s1790_s28 = smov [#allocation6]   ;;  %s1661_s15 = scalar_lea.hbm %s2202_s1, 128 }
  0x15   : > { %s2233_s25 = scalar_select %p1928_p10, 1, 0 }
  0x16   : > { %p1569_p11 = pneg %p1928_p10  ;;  %s394_s18 = sshll.u32 %s1790_s28, 4  ;;  %s1940_s18 = int_to_ptr.vmem [resolvable:$true] %s394_s18 }
  0x17   : > { %p1662_p13 = scmp.ne.s32.totalorder %s2202_s1, %s1661_s15  ;;  %p1668_p3 = scmp.lt.u32.totalorder %s1661_s15, %s2202_s1 }
  0x18   : > { %p1936_p12 = pnand %p2221_p9, %p1569_p11 }
  0x1a   : > { %p1663_p0 = pneg %p1936_p12 }
  0x1c   : > { %p1664_p1 = pnand %p1663_p0, %p1662_p13 }
  0x1e   : > { %p1665_p2 = pneg %p1664_p1 }
  0x20   : > { %p1670_p4 = pnand %p1668_p3, %p1665_p2 }
  0x22   : > { %1673 = shalt.err (!%p1670_p4)
}
  0x23   : > { %s1674_s29 = scalar_lea.vmem %s373_s27, 128  ;;  %p1682_p9 = scmp.lt.s32.totalorder %s373_s27, %s373_s27 }
  0x24   : > { %p1675_p7 = scmp.ne.s32.totalorder %s373_s27, %s1674_s29  ;;  %p1683_p6 = scmp.lt.s32.totalorder %s1674_s29, %s1674_s29 }
  0x26   : > { %p1677_p8 = pnand %p1675_p7, %p1663_p0  ;;  %p1684_p5 = por %p1683_p6, %p1682_p9 }
  0x28   : > { %p1678_p11 = pneg %p1677_p8 }
  0x2a   : > { %p1685_p10 = pnand %p1684_p5, %p1678_p11 }
  0x2c   : > { %1688 = shalt.err (!%p1685_p10)
}
  0x2d   : > { %1572 = dma.hbm_to_vmem [thread:$0]  (!%p1936_p12), %s2202_s1, 128, %s373_s27, [#allocation4]  }
  0x2e   : > { %s1689_s21 = scalar_lea.hbm %s2207_s6, 256 }
  0x2f   : > { %p1690_p13 = scmp.ne.s32.totalorder %s2207_s6, %s1689_s21  ;;  %p1696_p9 = scmp.lt.u32.totalorder %s1689_s21, %s2207_s6 }
  0x31   : > { %p1692_p6 = pnand %p1690_p13, %p1663_p0 }
  0x33   : > { %p1693_p5 = pneg %p1692_p6 }
  0x35   : > { %p1698_p10 = pnand %p1696_p9, %p1693_p5 }
  0x37   : > { %1701 = shalt.err (!%p1698_p10)
}
  0x38   : > { %s1702_s27 = scalar_lea.vmem %s1940_s18, 256  ;;  %p1710_p4 = scmp.lt.s32.totalorder %s1940_s18, %s1940_s18 }
  0x39   : > { %p1703_p1 = scmp.ne.s32.totalorder %s1940_s18, %s1702_s27  ;;  %p1711_p7 = scmp.lt.s32.totalorder %s1702_s27, %s1702_s27 }
  0x3b   : > { %p1705_p2 = pnand %p1703_p1, %p1663_p0  ;;  %p1712_p8 = por %p1711_p7, %p1710_p4 }
  0x3d   : > { %p1706_p3 = pneg %p1705_p2 }
  0x3f   : > { %p1713_p11 = pnand %p1712_p8, %p1706_p3 }
  0x41   : > { %1716 = shalt.err (!%p1713_p11)
}
  0x42   : > { %s1791_s16 = smov 64   ;;  %s1792_s19 = smov 4  }
  0x43   : > { %1575 = dma.hbm_to_vmem [thread:$0]  (!%p1936_p12), %s2207_s6, 256, %s1940_s18, [#allocation7], %s1791_s16, %s1791_s16, %s1792_s19  }
  0x44   : > { %p2235_p13 = scmp.ne.s32.totalorder %s2233_s25, 0 }
  0x45   : > { %p2236_p0 = scmp.eq.s32.totalorder (!%p2235_p13), %s1900_s17, 0 }
  0x46   : > { %438 = sbr.rel (%p2235_p13) target bundleno = 2711 (0xa97), region = 76 }
  0x4d   : > { %1762 = dma.done.wait (%p2236_p0), [#allocation4], 128   ;;  %p2237_p6 = pmov %p2236_p0 }
  0x4e   : > { %p2238_p5 = pmov %p2236_p0 }
  0x4f   : > { %1764 = vsyncadd (%p2237_p6), [#allocation4], 4294967168 }
  0x50   : > { %1766 = dma.done.wait (%p2238_p5), [#allocation7], 256   ;;  %p2239_p9 = pmov %p2236_p0 }
  0x51   : > { %p487_p10 = scmp.lt.s32.totalorder %s1900_s17, 1  ;;  %v1793_v0 = vmov 0.0   ;;  %vm1794_vm0 = vmmov 0   ;;  %v1631_v1 = vld [vmem:[%s2203_s2] sm:$0xff]   ;;  %v1632_v2 = vld [vmem:[%s2203_s2 + $0x8] sm:$0xff]   ;;  %vm519_vm1 = vcmask 261120  }
  0x52   : > { %1768 = vsyncadd (%p2239_p9), [#allocation7], 4294967040  ;;  %1475 = vmatprep.subr.bf16.mxu0 %v1793_v0  ;;  %1479 = vmatprep.mubr.msk.bf16.mxu0 %vm1794_vm0, %v1793_v0  ;;  %v493_v4 = vld [vmem:[#allocation3] sm:$0xff]  ;;  %v1411_v7 = vld [vmem:[%s2204_s3] ss:$0 sm:$0xff]  ;;  %s1795_s22 = smov 104  }
  0x53   : > { %s488_s25 = scalar_select %p487_p10, %s1900_s17, 1  ;;  %1483 = vmatprep.subr.bf16.mxu1 %v1793_v0  ;;  %1485 = vmatprep.mubr.msk.bf16.mxu1 %vm1794_vm0, %v1793_v0  ;;  %vm573_vm2 = vcmask 64512   ;;  %vm817_vm3 = vcmask 1043456   ;;  %vm1010_vm4 = vcmask 130112   ;;  %vm1016_vm5 = vcmask 195712  }
  0x54   : > { %1476 = vmatpush3.bf16.msra.mxu0 %v1631_v1  ;;  %s1796_s15 = smov 120   ;;  %s1799_s20 = smov 64   ;;  %vm1022_vm6 = vcmask 261312   ;;  %vm1231_vm7 = vcmask 523264  }
  0x55   : > { %s1410_s18 = sshll.u32 %s488_s25, 3  ;;  %1477 = vmatprep.subr.bf16.mxu0 %v1793_v0  ;;  %s1797_s25 = smov 96  }
  0x56   : > { %s490_s21 = scalar_lea.vmem %s2201_s0, %s1410_s18  ;;  %s1798_s18 = smov 112  }
  0x57   : > { %v492_v3 = vld [vmem:[%s490_s21] sm:$0xff]  ;;  %s1800_s29 = smov 8   ;;  %s1801_s27 = smov 16  }
  0x58   : > { %v2017_v5 = vadd.f32 %v493_v4, %v492_v3  ;;  %1478 = vmatpush3.bf16.msra.mxu0 %v1632_v2  ;;  %s1802_s16 = smov 24   ;;  %p2240_p1 = scmp.ne.s32.totalorder %s2230_s23, 0 }
  0x59   : > { %1489 = vmatprep.subr.bf16.mxu0 %v1793_v0 }
  0x5a   : > { %v495_v6 = vpack.c.bf16 %v2017_v5, %v2017_v5 }
  0x5c   : > { %1480 = vmatmul.mubr.msk.bf16.vlgmr.msra.gmra.mrb[0].mxu0 %vm519_vm1, %v495_v6 }
  0x5d   : > { %1491 = vmatprep.mubr.msk.bf16.mxu0 %vm1794_vm0, %v1793_v0 }
 0x12f   : > { %v557_v8 = vpop.f32.mrb[0].mxu0 }
 0x130   : > { %v558_v9 = vadd.f32 %v1411_v7, %v557_v8  ;;  %v1481_v10 = vpop.f32.mrb[1].mxu0 }
 0x131   : > { %v560_v11 = vpop.f32.mrb[2].mxu0 }
 0x132   : > { %v2028_v12 = vpack.c.bf16 %v558_v9, %v558_v9  ;;  %v1482_v13 = vpop.f32.mrb[3].mxu0 }
 0x134   : > { %569 = vrot.lane.b32.xlu1 %v2028_v12, %s1795_s22  ;;  %565 = vrot.lane.b32.xlu0 %v2028_v12, %s1796_s15 }
 0x138   : > { %571 = vrot.lane.b32.xlu1 %v2028_v12, %s1797_s25  ;;  %567 = vrot.lane.b32.xlu0 %v2028_v12, %s1798_s18 }
 0x1a6   : > { %v2034_v14 = vpop.permute.xlu1 %569  ;;  %v566_v15 = vpop.permute.xlu0 %565 }
 0x1a7   : > { %620 = vrot.lane.b32.xlu0 %v566_v15, %s1797_s25 }
 0x1aa   : > { %v572_v16 = vpop.permute.xlu1 %571  ;;  %v2036_v17 = vpop.permute.xlu0 %567 }
 0x1ab   : > { %716 = vrot.lane.b32.xlu0 %v2034_v14, %s1797_s25  ;;  %668 = vrot.lane.b32.xlu1 %v2036_v17, %s1797_s25  ;;  %v578_v18 = vsel %vm573_vm2, %v572_v16, 0 }
 0x1ac   : > { %1484 = vmatpush3.bf16.xpose.msra.mxu1 %v578_v18 }
 0x1ad   : > { %1495 = vmatprep.subr.bf16.mxu1 %v1793_v0 }
 0x1b3   : > { %1486 = vmatmul.mubr.msk.bf16.vlgmr.msra.gmra.mrb[0].mxu1 %vm573_vm2, %v2028_v12 }
 0x1b4   : > { %1497 = vmatprep.mubr.msk.bf16.mxu1 %vm1794_vm0, %v1793_v0 }
 0x219   : > { %v621_v19 = vpop.permute.xlu0 %620 }
 0x21a   : > { %v626_v20 = vsel %vm573_vm2, %v621_v19, 0 }
 0x21b   : > { %1490 = vmatpush3.bf16.xpose.msra.mxu0 %v626_v20 }
 0x21c   : > { %1501 = vmatprep.subr.bf16.mxu0 %v1793_v0 }
 0x21d   : > { %v669_v21 = vpop.permute.xlu1 %668  ;;  %v717_v23 = vpop.permute.xlu0 %716 }
 0x21e   : > { %v674_v22 = vsel %vm573_vm2, %v669_v21, 0  ;;  %v722_v24 = vsel %vm573_vm2, %v717_v23, 0 }
 0x21f   : > { %1496 = vmatpush3.bf16.xpose.msra.mxu1 %v674_v22 }
 0x220   : > { %1507 = vmatprep.subr.bf16.mxu1 %v1793_v0 }
 0x222   : > { %1492 = vmatmul.mubr.msk.bf16.vlgmr.msra.gmra.mrb[4].mxu0 %vm573_vm2, %v566_v15 }
 0x223   : > { %1502 = vmatpush3.bf16.xpose.msra.mxu0 %v722_v24  ;;  %1503 = vmatprep.mubr.msk.bf16.mxu0 %vm1794_vm0, %v1793_v0 }
 0x224   : > { %1513 = vmatprep.subr.bf16.mxu0 %v1793_v0 }
 0x226   : > { %1498 = vmatmul.mubr.msk.bf16.vlgmr.msra.gmra.mrb[4].mxu1 %vm573_vm2, %v2036_v17 }
 0x227   : > { %1509 = vmatprep.mubr.msk.bf16.mxu1 %vm1794_vm0, %v1793_v0 }
 0x22a   : > { %1504 = vmatmul.mubr.msk.bf16.vlgmr.msra.gmra.mrb[8].mxu0 %vm573_vm2, %v2034_v14 }
 0x22b   : > { %1515 = vmatprep.mubr.msk.bf16.mxu0 %vm1794_vm0, %v1793_v0 }
 0x286   : > { %v614_v25 = vpop.f32.mrb[0].mxu1 }
 0x287   : > { %v1487_v26 = vpop.f32.mrb[1].mxu1  ;;  %v764_v27 = vsel %vm573_vm2, %v614_v25, -inf }
 0x288   : > { %v617_v28 = vpop.f32.mrb[2].mxu1  ;;  %765 = vmax.xlane.f32.xlu1 %v764_v27 }
 0x289   : > { %v1488_v29 = vpop.f32.mrb[3].mxu1 }
 0x2f5   : > { %v662_v30 = vpop.f32.mrb[4].mxu0 }
 0x2f6   : > { %v1493_v31 = vpop.f32.mrb[5].mxu0  ;;  %v767_v32 = vsel %vm573_vm2, %v662_v30, -inf }
 0x2f7   : > { %768 = vmax.xlane.f32.xlu0 %v767_v32  ;;  %v665_v33 = vpop.f32.mrb[6].mxu0  ;;  %v1633_v31 = vld [vmem:[%s2205_s4] sm:$0xff]   ;;  %v1634_v32 = vld [vmem:[%s2205_s4 + $0x8] sm:$0xff]  }
 0x2f8   : > { %v1494_v34 = vpop.f32.mrb[7].mxu0 }
 0x2f9   : > { %v710_v35 = vpop.f32.mrb[4].mxu1 }
 0x2fa   : > { %v1499_v36 = vpop.f32.mrb[5].mxu1  ;;  %v770_v37 = vsel %vm573_vm2, %v710_v35, -inf }
 0x2fb   : > { %v713_v38 = vpop.f32.mrb[6].mxu1  ;;  %771 = vmax.xlane.f32.xlu0 %v770_v37 }
 0x2fc   : > { %v1500_v39 = vpop.f32.mrb[7].mxu1 }
 0x2fd   : > { %v758_v40 = vpop.f32.mrb[8].mxu0 }
 0x2fe   : > { %v1505_v41 = vpop.f32.mrb[9].mxu0  ;;  %v773_v42 = vsel %vm573_vm2, %v758_v40, -inf }
 0x2ff   : > { %774 = vmax.xlane.f32.xlu1 %v773_v42  ;;  %v761_v43 = vpop.f32.mrb[10].mxu0 }
 0x300   : > { %v1506_v44 = vpop.f32.mrb[11].mxu0 }
 0x310   : > { %861 = vrot.lane.b32.xlu1 %v566_v15, %s1799_s20 }
 0x311   : > { %812 = vrot.lane.b32.xlu0 %v2028_v12, %s1799_s20 }
 0x315   : > { %v766_v45 = vpop.xlane.xlu1 %765 }
 0x316   : > { %v776_v46 = vsub.f32 %v614_v25, %v766_v45 }
 0x318   : > { %v780_v47 = vmul.f32 1.442695, %v776_v46 }
 0x31a   : > { %1641 = vpow2.f32 %v780_v47 }
 0x324   : > { %v1642_v48 = vpop.eup %1641 }
 0x325   : > { %v788_v49 = vsel %vm573_vm2, %v1642_v48, 0.0 }
 0x330   : > { %789 = vadd.xlane.f32.xlu0 %v788_v49 }
 0x384   : > { %v769_v50 = vpop.xlane.xlu0 %768 }
 0x385   : > { %v777_v51 = vsub.f32 %v662_v30, %v769_v50  ;;  %v1423_v50 = vld [vmem:[%s2206_s5] ss:$0 sm:$0xff] }
 0x387   : > { %v782_v52 = vmul.f32 1.442695, %v777_v51 }
 0x388   : > { %v772_v53 = vpop.xlane.xlu0 %771 }
 0x389   : > { %1643 = vpow2.f32 %v782_v52  ;;  %v778_v54 = vsub.f32 %v710_v35, %v772_v53 }
 0x38b   : > { %v784_v55 = vmul.f32 1.442695, %v778_v54 }
 0x38c   : > { %v813_v56 = vpop.permute.xlu0 %812  ;;  %v775_v57 = vpop.xlane.xlu1 %774 }
 0x38d   : > { %1645 = vpow2.f32 %v784_v55  ;;  %v819_v58 = vsel %vm817_vm3, %v813_v56, 0  ;;  %v779_v59 = vsub.f32 %v758_v40, %v775_v57 }
 0x38e   : > { %1508 = vmatpush3.bf16.msra.mxu1 %v819_v58 }
 0x38f   : > { %v786_v60 = vmul.f32 1.442695, %v779_v59  ;;  %1519 = vmatprep.subr.bf16.mxu1 %v1793_v0 }
 0x390   : > { %v862_v61 = vpop.permute.xlu1 %861 }
 0x391   : > { %1647 = vpow2.f32 %v786_v60  ;;  %v867_v62 = vsel %vm817_vm3, %v862_v61, 0 }
 0x392   : > { %1514 = vmatpush3.bf16.msra.mxu0 %v867_v62 }
 0x393   : > { %v1644_v63 = vpop.eup %1643  ;;  %1525 = vmatprep.subr.bf16.mxu0 %v1793_v0 }
 0x394   : > { %v791_v1 = vsel %vm573_vm2, %v1644_v63, 0.0 }
 0x395   : > { %792 = vadd.xlane.f32.xlu1 %v791_v1  ;;  %v1636_v1 = vld [vmem:[#allocation6 + $0x8] sm:$0xff]  }
 0x397   : > { %v1646_v2 = vpop.eup %1645 }
 0x398   : > { %v794_v3 = vsel %vm573_vm2, %v1646_v2, 0.0 }
 0x399   : > { %795 = vadd.xlane.f32.xlu0 %v794_v3 }
 0x39b   : > { %v1648_v4 = vpop.eup %1647 }
 0x39c   : > { %v797_v6 = vsel %vm573_vm2, %v1648_v4, 0.0 }
 0x39d   : > { %798 = vadd.xlane.f32.xlu1 %v797_v6 }
 0x3ae   : > { %909 = vrot.lane.b32.xlu1 %v2036_v17, %s1799_s20 }
 0x3af   : > { %957 = vrot.lane.b32.xlu0 %v2034_v14, %s1799_s20  ;;  %s484_s20 = sand.u32 1, %s1779_s30  }
 0x3b0   : > { %s1409_s24 = sshll.u32 %s484_s20, 3  ;;  %s1307_s18 = scalar_lea.sflag [#allocation5], %s484_s20 }
 0x3bd   : > { %v790_v7 = vpop.xlane.xlu0 %789 }
 0x3be   : > { %1649 = vrcp.f32 %v790_v7 }
 0x3c8   : > { %v1650_v8 = vpop.eup %1649 }
 0x3c9   : > { %v804_v9 = vmul.f32 %v1650_v8, %v1642_v48  ;;  %v1427_v8 = vld [vmem:[%s2211_s10] ss:$0 sm:$0xff] }
 0x3cb   : > { %v808_v10 = vpack.c.bf16 %v804_v9, %v804_v9 }
 0x3cd   : > { %1510 = vmatmul.mubr.msk.bf16.vlgmr.msra.gmra.mrb[8].mxu1 %vm573_vm2, %v808_v10  ;;  %v1428_v10 = vld [vmem:[%s2212_s11] ss:$0 sm:$0xff] }
 0x3ce   : > { %1521 = vmatprep.mubr.msk.bf16.mxu1 %vm1794_vm0, %v1793_v0 }
 0x422   : > { %v793_v11 = vpop.xlane.xlu1 %792 }
 0x423   : > { %1651 = vrcp.f32 %v793_v11 }
 0x426   : > { %v796_v12 = vpop.xlane.xlu0 %795 }
 0x427   : > { %1653 = vrcp.f32 %v796_v12 }
 0x42a   : > { %v799_v13 = vpop.xlane.xlu1 %798  ;;  %v958_v14 = vpop.permute.xlu0 %957 }
 0x42b   : > { %1655 = vrcp.f32 %v799_v13  ;;  %v963_v22 = vsel %vm817_vm3, %v958_v14, 0 }
 0x42d   : > { %v1652_v15 = vpop.eup %1651 }
 0x42e   : > { %v805_v16 = vmul.f32 %v1652_v15, %v1644_v63  ;;  %v910_v17 = vpop.permute.xlu1 %909  ;;  %v1635_v63 = vld [vmem:[#allocation6] sm:$0xff]  }
 0x42f   : > { %v915_v18 = vsel %vm817_vm3, %v910_v17, 0  ;;  %v1639_v15 = vld [vmem:[%s2209_s8 + $0x10] sm:$0xff]   ;;  %v1429_v17 = vld [vmem:[%s2208_s7] ss:$0 sm:$0xff] }
 0x430   : > { %1520 = vmatpush3.bf16.msra.mxu1 %v915_v18  ;;  %v809_v19 = vpack.c.bf16 %v805_v16, %v805_v16  ;;  %v1640_v16 = vld [vmem:[%s2209_s8 + $0x18] sm:$0xff]  }
 0x431   : > { %v1654_v20 = vpop.eup %1653  ;;  %1531 = vmatprep.subr.bf16.mxu1 %v1793_v0 }
 0x432   : > { %v806_v21 = vmul.f32 %v1654_v20, %v1646_v2  ;;  %1516 = vmatmul.mubr.msk.bf16.vlgmr.msra.gmra.mrb[12].mxu0 %vm573_vm2, %v809_v19  ;;  %v1638_v2 = vld [vmem:[%s2209_s8 + $0x8] sm:$0xff]  }
 0x433   : > { %1526 = vmatpush3.bf16.msra.mxu0 %v963_v22  ;;  %1527 = vmatprep.mubr.msk.bf16.mxu0 %vm1794_vm0, %v1793_v0 }
 0x434   : > { %v810_v23 = vpack.c.bf16 %v806_v21, %v806_v21  ;;  %1539 = vmatprep.subr.bf16.mxu0 %v1793_v0 }
 0x435   : > { %v1656_v24 = vpop.eup %1655 }
 0x436   : > { %v807_v25 = vmul.f32 %v1656_v24, %v1648_v4  ;;  %1522 = vmatmul.mubr.msk.bf16.vlgmr.msra.gmra.mrb[12].mxu1 %vm573_vm2, %v810_v23 }
 0x437   : > { %1535 = vmatprep.mubr.msk.bf16.mxu1 %vm1794_vm0, %v1793_v0  ;;  %1532 = vmatpush3.bf16.msra.mxu1 %v1633_v31 }
 0x438   : > { %v811_v26 = vpack.c.bf16 %v807_v25, %v807_v25  ;;  %1533 = vmatprep.subr.bf16.mxu1 %v1793_v0 }
 0x43a   : > { %1528 = vmatmul.mubr.msk.bf16.vlgmr.msra.gmra.mrb[16].mxu0 %vm573_vm2, %v811_v26 }
 0x43b   : > { %1543 = vmatprep.mubr.msk.bf16.mxu0 %vm1794_vm0, %v1793_v0  ;;  %1534 = vmatpush3.bf16.msra.mxu1 %v1634_v32 }
 0x43c   : > { %1547 = vmatprep.subr.bf16.mxu1 %v1793_v0  ;;  %1540 = vmatpush3.bf16.msra.mxu0 %v1635_v63 }
 0x43d   : > { %1541 = vmatprep.subr.bf16.mxu0 %v1793_v0 }
 0x440   : > { %1542 = vmatpush3.bf16.msra.mxu0 %v1636_v1 }
 0x4a0   : > { %v855_v27 = vpop.f32.mrb[8].mxu1 }
 0x4a1   : > { %1005 = vst.msk [vmem:[#allocation2] sm:$0xff] %vm573_vm2, %v855_v27  ;;  %v1511_v28 = vpop.f32.mrb[9].mxu1 }
 0x4a2   : > { %v858_v29 = vpop.f32.mrb[10].mxu1 }
 0x4a3   : > { %v1512_v30 = vpop.f32.mrb[11].mxu1 }
 0x505   : > { %v903_v33 = vpop.f32.mrb[12].mxu0 }
 0x506   : > { %1007 = vrot.lane.b32.xlu1 %v903_v33, %s1800_s29  ;;  %v1517_v34 = vpop.f32.mrb[13].mxu0 }
 0x507   : > { %v906_v35 = vpop.f32.mrb[14].mxu0 }
 0x508   : > { %v1518_v36 = vpop.f32.mrb[15].mxu0 }
 0x509   : > { %v951_v37 = vpop.f32.mrb[12].mxu1 }
 0x50a   : > { %1013 = vrot.lane.b32.xlu0 %v951_v37, %s1801_s27  ;;  %v1523_v38 = vpop.f32.mrb[13].mxu1  ;;  %s1442_s27 = sshll.u32 %s1900_s17, 7  ;;  %s1803_s17 = smov [#allocation8]  }
 0x50b   : > { %v954_v39 = vpop.f32.mrb[14].mxu1  ;;  %s2158_s25 = scalar_lea.hbm %s2215_s14, %s1442_s27 }
 0x50c   : > { %v1524_v40 = vpop.f32.mrb[15].mxu1 }
 0x50d   : > { %v999_v41 = vpop.f32.mrb[16].mxu0  ;;  %v1439_v40 = vld [vmem:[%s2213_s12] ss:$0 sm:$0xff] }
 0x50e   : > { %1019 = vrot.lane.b32.xlu1 %v999_v41, %s1802_s16  ;;  %v1529_v42 = vpop.f32.mrb[17].mxu0  ;;  %s486_s16 = scalar_lea.vmem [#allocation8], %s1409_s24  ;;  %s1721_s24 = sshll.u32 %s1803_s17, 4  ;;  %s1722_s24 = int_to_ptr.vmem [resolvable:$false] %s1721_s24 }
 0x50f   : > { %v1002_v43 = vpop.f32.mrb[18].mxu0  ;;  %v1440_v42 = vld [vmem:[%s2214_s13] ss:$0 sm:$0xff]  ;;  %s1320_s19 = sshll.u32 %s486_s16, 4  ;;  %s1723_s26 = scalar_lea.vmem %s1722_s24, 256  ;;  %s2160_s19 = int_to_ptr.vmem [resolvable:$true] %s1320_s19 }
 0x510   : > { %v1530_v44 = vpop.f32.mrb[19].mxu0  ;;  %s1717_s21 = scalar_lea.vmem %s2160_s19, 128  ;;  %p1724_p4 = scmp.lt.s32.totalorder %s2160_s19, %s1722_s24 }
 0x511   : > { %p1718_p12 = scmp.ne.s32.totalorder %s2160_s19, %s1717_s21  ;;  %p1725_p7 = scmp.lt.s32.totalorder %s1723_s26, %s1717_s21 }
 0x513   : > { %p1719_p2 = pnand %p1718_p12, %p2240_p1  ;;  %p1726_p8 = por %p1725_p7, %p1724_p4 }
 0x515   : > { %p1720_p3 = pneg %p1719_p2 }
 0x517   : > { %p1727_p11 = pnand %p1726_p8, %p1720_p3 }
 0x578   : > { %v1008_v45 = vpop.permute.xlu1 %1007 }
 0x579   : > { %1011 = vst.msk [vmem:[#allocation2] sm:$0xff] %vm1010_vm4, %v1008_v45 }
 0x57c   : > { %v1014_v46 = vpop.permute.xlu0 %1013 }
 0x57d   : > { %1017 = vst.msk [vmem:[#allocation2] sm:$0xff] %vm1016_vm5, %v1014_v46 }
 0x580   : > { %v1020_v47 = vpop.permute.xlu1 %1019 }
 0x581   : > { %1023 = vst.msk [vmem:[#allocation2] sm:$0xff] %vm1022_vm6, %v1020_v47 }
 0x588   : > { %v1024_v48 = vld [vmem:[#allocation2] sm:$0xff] }
 0x589   : > { %v1025_v49 = vpack.c.bf16 %v1024_v48, %v1024_v48 }
 0x58b   : > { %1536 = vmatmul.mubr.msk.bf16.vlgmr.msra.gmra.mrb[16].mxu1 %vm519_vm1, %v1025_v49 }
 0x58c   : > { %1555 = vmatprep.mubr.msk.bf16.mxu1 %vm1794_vm0, %v1793_v0 }
 0x65e   : > { %v1086_v51 = vpop.f32.mrb[16].mxu1 }
 0x65f   : > { %v1087_v52 = vadd.f32 %v1423_v50, %v1086_v51  ;;  %v1537_v53 = vpop.f32.mrb[17].mxu1 }
 0x660   : > { %v1089_v54 = vpop.f32.mrb[18].mxu1 }
 0x661   : > { %v1538_v55 = vpop.f32.mrb[19].mxu1  ;;  %v1092_v56 = vadd.f32 %v1087_v52, %v2017_v5  ;;  %v1637_v5 = vld [vmem:[%s2209_s8] sm:$0xff]  }
 0x662   : > { %1548 = vmatpush3.bf16.msra.mxu1 %v1637_v5 }
 0x663   : > { %v1093_v57 = vsel %vm519_vm1, %v1092_v56, 0.0  ;;  %1549 = vmatprep.subr.bf16.mxu1 %v1793_v0 }
 0x664   : > { %1094 = vadd.xlane.f32.xlu0 %v1093_v57 }
 0x666   : > { %1550 = vmatpush3.bf16.msra.mxu1 %v1638_v2 }
 0x667   : > { %1551 = vmatprep.subr.bf16.mxu1 %v1793_v0 }
 0x66a   : > { %1552 = vmatpush3.bf16.msra.mxu1 %v1639_v15 }
 0x66b   : > { %1553 = vmatprep.subr.bf16.mxu1 %v1793_v0  ;;  %v1433_v0 = vld [vmem:[%s2210_s9] ss:$0 sm:$0xff] }
 0x66e   : > { %1554 = vmatpush3.bf16.msra.mxu1 %v1640_v16 }
 0x6f1   : > { %v1095_v58 = vpop.xlane.xlu0 %1094 }
 0x6f2   : > { %v1097_v59 = vmul.f32 0.03125, %v1095_v58 }
 0x6f4   : > { %v1098_v60 = vsub.f32 %v1092_v56, %v1097_v59 }
 0x6f6   : > { %v1099_v61 = vmul.f32 %v1098_v60, %v1098_v60 }
 0x6f8   : > { %v1100_v62 = vsel %vm519_vm1, %v1099_v61, 0.0 }
 0x6f9   : > { %1101 = vadd.xlane.f32.xlu1 %v1100_v62 }
 0x786   : > { %v1102_v3 = vpop.xlane.xlu1 %1101 }
 0x787   : > { %v1103_v4 = vmul.f32 0.03125, %v1102_v3 }
 0x789   : > { %v1104_v6 = vadd.f32 1e-05, %v1103_v4 }
 0x78b   : > { %1657 = vrsqrt.f32 %v1104_v6 }
 0x795   : > { %v1658_v7 = vpop.eup %1657 }
 0x796   : > { %v1106_v9 = vmul.f32 %v1658_v7, %v1098_v60 }
 0x798   : > { %v1114_v11 = vmul.f32 %v1427_v8, %v1106_v9 }
 0x79a   : > { %v1122_v12 = vadd.f32 %v1428_v10, %v1114_v11 }
 0x79c   : > { %v1123_v13 = vpack.c.bf16 %v1122_v12, %v1122_v12 }
 0x79e   : > { %1544 = vmatmul.mubr.msk.bf16.vlgmr.msra.gmra.mrb[20].mxu0 %vm519_vm1, %v1123_v13 }
 0x871   : > { %v1184_v14 = vpop.f32.mrb[20].mxu0 }
 0x872   : > { %v1185_v18 = vadd.f32 %v1429_v17, %v1184_v14  ;;  %v1545_v19 = vpop.f32.mrb[21].mxu0 }
 0x873   : > { %v1187_v20 = vpop.f32.mrb[22].mxu0 }
 0x874   : > { %v1190_v21 = vmax.f32 %v1185_v18, 0.0  ;;  %v1546_v22 = vpop.f32.mrb[23].mxu0 }
 0x876   : > { %v1191_v23 = vpack.c.bf16 %v1190_v21, %v1190_v21 }
 0x878   : > { %1556 = vmatmul.mubr.msk.bf16.vlgmr.msra.gmra.mrb[20].mxu1 %vm1231_vm7, %v1191_v23 }
 0x94b   : > { %v1269_v24 = vpop.f32.mrb[20].mxu1 }
 0x94c   : > { %v1270_v25 = vadd.f32 %v1433_v0, %v1269_v24  ;;  %v1557_v26 = vpop.f32.mrb[21].mxu1 }
 0x94d   : > { %v1272_v27 = vpop.f32.mrb[22].mxu1 }
 0x94e   : > { %v1558_v28 = vpop.f32.mrb[23].mxu1  ;;  %v1275_v29 = vadd.f32 %v1270_v25, %v1122_v12 }
 0x950   : > { %v1276_v30 = vsel %vm519_vm1, %v1275_v29, 0.0 }
 0x951   : > { %1277 = vadd.xlane.f32.xlu0 %v1276_v30 }
 0x9de   : > { %v1278_v31 = vpop.xlane.xlu0 %1277 }
 0x9df   : > { %v1279_v32 = vmul.f32 0.03125, %v1278_v31 }
 0x9e1   : > { %v1280_v33 = vsub.f32 %v1275_v29, %v1279_v32 }
 0x9e3   : > { %v1281_v34 = vmul.f32 %v1280_v33, %v1280_v33 }
 0x9e5   : > { %v1282_v35 = vsel %vm519_vm1, %v1281_v34, 0.0 }
 0x9e6   : > { %1283 = vadd.xlane.f32.xlu0 %v1282_v35 }
 0xa73   : > { %v1284_v36 = vpop.xlane.xlu0 %1283 }
 0xa74   : > { %v1285_v37 = vmul.f32 0.03125, %v1284_v36 }
 0xa76   : > { %v1286_v38 = vadd.f32 1e-05, %v1285_v37 }
 0xa78   : > { %1659 = vrsqrt.f32 %v1286_v38 }
 0xa82   : > { %v1660_v39 = vpop.eup %1659 }
 0xa83   : > { %v1288_v41 = vmul.f32 %v1660_v39, %v1280_v33 }
 0xa85   : > { %v1296_v43 = vmul.f32 %v1439_v40, %v1288_v41 }
 0xa87   : > { %v1304_v44 = vadd.f32 %v1440_v42, %v1296_v43 }
 0xa89   : > { %1305 = vst.msk [vmem:[%s486_s16] sm:$0xff] %vm519_vm1, %v1304_v44 }
 0xa8a   : > { %1730 = shalt.err (!%p1727_p11)
}
 0xa8b   : > { %s1731_s20 = scalar_lea.hbm %s2158_s25, 128  ;;  %s1735_s27 = scalar_lea.hbm %s2215_s14, 256 }
 0xa8c   : > { %p1732_p13 = scmp.ne.s32.totalorder %s2158_s25, %s1731_s20  ;;  %p1736_p5 = scmp.lt.u32.totalorder %s2158_s25, %s2215_s14 }
 0xa8d   : > { %p1737_p9 = scmp.lt.u32.totalorder %s1735_s27, %s1731_s20  ;;  %p1739_p12 = scmp.lt.u32.totalorder %s1731_s20, %s2158_s25 }
 0xa8e   : > { %p1733_p0 = pnand %p1732_p13, %p2240_p1 }
 0xa8f   : > { %p1738_p10 = por %p1737_p9, %p1736_p5 }
 0xa90   : > { %p1734_p6 = pneg %p1733_p0 }
 0xa91   : > { %p1740_p2 = por %p1739_p12, %p1738_p10 }
 0xa93   : > { %p1741_p3 = pnand %p1740_p2, %p1734_p6 }
 0xa95   : > { %1744 = shalt.err (!%p1741_p3)
}
 0xa96   : > { %1567 = dma.vmem_to_hbm [thread:$0]  (%p2240_p1), %s2160_s19, 128, %s2158_s25, %s1307_s18  }
 0xa97 PF: > { %s2241_s15 = sld [smem:[#allocation14_spill]]  ;;  %s2242_s21 = sld [smem:[#allocation12_spill]] }
 0xa98   : > { %s2243_s17 = sld [smem:[#allocation17_spill]] }
 0xa9d   : > { %p1584_p4 = scmp.ge.s32.totalorder %s2241_s15, 2  ;;  %s1332_s24 = sand.u32 1, %s2242_s21  }
 0xa9e   : > { %p2244_p7 = scmp.ne.s32.totalorder %s2243_s17, 0  ;;  %s1333_s26 = scalar_lea.sflag [#allocation5], %s1332_s24 }
 0xaa0   : > { %p1577_p8 = pnand %p1584_p4, %p2244_p7 }
 0xaa2   : > { %1770 = dma.done.wait (!%p1577_p8), %s1333_s26, 128  }
 0xaa3   : > { %1772 = vsyncadd (!%p1577_p8), %s1333_s26, 4294967168  ;;  %s2245_s16 = sld [smem:[#allocation15_spill]]  ;;  %s2246_s20 = sld [smem:[#allocation13_spill]] }
 0xaa4   : > { %s2247_s15 = sld [smem:[#allocation16_spill]]  ;;  %s2248_s29 = smov %s1779_s30 }
 0xaa9   : > { %p26_p11 = scmp.ge.s32.totalorder %s2245_s16, 4   ;;  %s2249_s30 = smov %s2246_s20 }
 0xaab   :  { %28 = sbr.rel (!%p26_p11) target bundleno = 5 (0x5), region = 120 }
 0xab2   :  { %1338 = vsyncpa [#allocation4], 1 }
 0xab3   :  { %1340 = vsyncpa [#allocation4 + $0x1], 1 }
 0xab4   :  { %1341 = vsyncpa [#allocation7], 1 }
 0xab5   :  { %1342 = vsyncpa [#allocation5], 1 }
 0xab6   :  { %1344 = vsyncpa [#allocation5 + $0x1], 1 }

</bundles_post_ra>
